<compile_context>
chip_gen: v5e
topology: v5e:2x2
jax: 0.10.0
libtpu: 0.0.40
codegen_flags: <defaults>
</compile_context>

<pallas_src>
import functools

import jax
import jax.numpy as jnp
import numpy as np
from jax import lax
from jax.experimental import pallas as pl
from jax.experimental.pallas import tpu as pltpu


def bottleneck_kernel(x_ref, s1_ref, b1_ref, w1_ref, s2_ref, b2_ref, w2_ref,
                      out_ref):
    # Block shapes:
    #   x_ref : (1, H, W, Cin)  f32        s1/b1 : (1, Cin)  f32
    #   w1_ref: (Cin, C4)       bf16       s2/b2 : (1, C4)   f32
    #   w2_ref: (3, 3*C4, G)    bf16       out_ref: (1, H, W, G + Cin)
    _, H, W, Cin = x_ref.shape
    C4 = w1_ref.shape[1]
    G = out_ref.shape[3] - Cin

    x = x_ref[0]                                          # (H, W, Cin) f32
    a = jnp.maximum(x * s1_ref[0].reshape(1, 1, Cin)
                    + b1_ref[0].reshape(1, 1, Cin), 0.0)  # BN1 + ReLU (f32)

    # --- conv1: 1x1 conv as a channel matmul on the MXU (bf16 in, f32 acc) ---
    h1 = jnp.dot(a.reshape(H * W, Cin).astype(jnp.bfloat16), w1_ref[...],
                 preferred_element_type=jnp.float32)      # (H*W, C4)
    b2v = jnp.maximum(h1 * s2_ref[...] + b2_ref[...], 0.0)  # BN2 + ReLU (f32)
    b3 = b2v.reshape(H, W, C4).astype(jnp.bfloat16)       # (H, W, C4)

    # --- conv2: 3x3 conv, padding=1, as a "row im2col" ---
    # Width-direction (sublane) shifts with explicit zero border columns.
    zcol = jnp.zeros((H, 1, C4), jnp.bfloat16)
    s_m1 = jnp.concatenate([zcol, b3[:, :W - 1, :]], axis=1)   # b[h, w-1]  (kw=0)
    s_p1 = jnp.concatenate([b3[:, 1:, :], zcol], axis=1)       # b[h, w+1]  (kw=2)
    S = jnp.concatenate([s_m1, b3, s_p1], axis=-1)             # (H, W, 3*C4)
    S_flat = S.reshape(H * W, 3 * C4)

    # One matmul per kernel row kh: r_kh[h', w] = sum_kw b[h', w+kw-1] @ W2[kh, kw].
    r0 = jnp.dot(S_flat, w2_ref[0],
                 preferred_element_type=jnp.float32).reshape(H, W, G)
    r1 = jnp.dot(S_flat, w2_ref[1],
                 preferred_element_type=jnp.float32).reshape(H, W, G)
    r2 = jnp.dot(S_flat, w2_ref[2],
                 preferred_element_type=jnp.float32).reshape(H, W, G)

    # Combine rows: y[h] = r0[h-1] + r1[h] + r2[h+1], zero-padded at the borders.
    zrow = jnp.zeros((1, W, G), jnp.float32)
    y = (r1
         + jnp.concatenate([zrow, r0[:H - 1]], axis=0)
         + jnp.concatenate([r2[1:], zrow], axis=0))            # (H, W, G) f32

    # Fused channel concat: out = cat([conv2 output, x passthrough], channel).
    out_ref[0] = jnp.concatenate([y.astype(out_ref.dtype), x], axis=-1)


def bottleneck_forward(x_nhwc, params):
    """x_nhwc: (N, H, W, Cin) f32. Returns (N, H, W, G + Cin) = cat([y, x], channel)."""
    s1, b1, w1_mat, s2, b2, w2_rows = params
    N, H, W, Cin = x_nhwc.shape
    C4 = w1_mat.shape[1]
    G = w2_rows.shape[2]

    return pl.pallas_call(
        bottleneck_kernel,
        out_shape=jax.ShapeDtypeStruct((N, H, W, G + Cin), x_nhwc.dtype),
        grid=(N,),
        in_specs=[
            pl.BlockSpec((1, H, W, Cin), lambda b: (b, 0, 0, 0)),
            pl.BlockSpec((1, Cin), lambda b: (0, 0)),
            pl.BlockSpec((1, Cin), lambda b: (0, 0)),
            pl.BlockSpec((Cin, C4), lambda b: (0, 0)),
            pl.BlockSpec((1, C4), lambda b: (0, 0)),
            pl.BlockSpec((1, C4), lambda b: (0, 0)),
            pl.BlockSpec((3, 3 * C4, G), lambda b: (0, 0, 0)),
        ],
        out_specs=pl.BlockSpec((1, H, W, G + Cin), lambda b: (b, 0, 0, 0)),
        compiler_params=pltpu.CompilerParams(
            dimension_semantics=("parallel",),          # batch axis shards across TCs (v7x)
            vmem_limit_bytes=32 * 1024 * 1024),
    )(x_nhwc, s1, b1, w1_mat, s2, b2, w2_rows)


def make_params(key, in_planes, growth_rate):
    """Deterministic synthetic parameters matching the PyTorch module's shapes."""
    C4 = 4 * growth_rate
    ks = jax.random.split(key, 10)
    eps = 1e-5

    # Conv weights (PyTorch OIHW shapes).
    w1_oihw = 0.1 * jax.random.normal(ks[0], (C4, in_planes, 1, 1), jnp.float32)
    w2_oihw = 0.1 * jax.random.normal(ks[1], (growth_rate, C4, 3, 3), jnp.float32)

    # BN1 / BN2 params and running stats.
    g1 = 1.0 + 0.1 * jax.random.normal(ks[2], (in_planes,), jnp.float32)
    be1 = 0.1 * jax.random.normal(ks[3], (in_planes,), jnp.float32)
    rm1 = 0.1 * jax.random.normal(ks[4], (in_planes,), jnp.float32)
    rv1 = jax.random.uniform(ks[5], (in_planes,), jnp.float32, 0.5, 1.5)
    g2 = 1.0 + 0.1 * jax.random.normal(ks[6], (C4,), jnp.float32)
    be2 = 0.1 * jax.random.normal(ks[7], (C4,), jnp.float32)
    rm2 = 0.1 * jax.random.normal(ks[8], (C4,), jnp.float32)
    rv2 = jax.random.uniform(ks[9], (C4,), jnp.float32, 0.5, 1.5)

    # Fold BN (eval mode) into per-channel scale/shift (kept f32).
    scale1 = g1 / jnp.sqrt(rv1 + eps)
    shift1 = be1 - rm1 * scale1
    scale2 = g2 / jnp.sqrt(rv2 + eps)
    shift2 = be2 - rm2 * scale2

    # Kernel-friendly weight layouts (bf16 -> halves weight HBM/VMEM traffic).
    w1_mat = w1_oihw[:, :, 0, 0].T.astype(jnp.bfloat16)            # (Cin, C4)
    w2_rows = (jnp.transpose(w2_oihw, (2, 3, 1, 0))                # (KH, KW, C4, G)
               .reshape(3, 3 * C4, growth_rate)                    # kw-major K blocks
               .astype(jnp.bfloat16))

    kernel_params = (scale1.reshape(1, -1), shift1.reshape(1, -1), w1_mat,
                     scale2.reshape(1, -1), shift2.reshape(1, -1), w2_rows)

    # Reference (f32, NHWC) parameters.
    w1_hwio = jnp.transpose(w1_oihw, (2, 3, 1, 0))                 # (1,1,Cin,C4)
    w2_hwio = jnp.transpose(w2_oihw, (2, 3, 1, 0))                 # (3,3,C4,G)
    ref_params = (scale1, shift1, w1_hwio, scale2, shift2, w2_hwio)
    return kernel_params, ref_params


def reference_forward(x_nhwc, ref_params):
    """Plain-JAX f32 reference (NHWC, eval-mode BN), matching PyTorch semantics."""
    scale1, shift1, w1_hwio, scale2, shift2, w2_hwio = ref_params
    a = jnp.maximum(x_nhwc * scale1 + shift1, 0.0)
    h = lax.conv_general_dilated(a, w1_hwio, (1, 1), "VALID",
                                 dimension_numbers=("NHWC", "HWIO", "NHWC"))
    b = jnp.maximum(h * scale2 + shift2, 0.0)
    y = lax.conv_general_dilated(b, w2_hwio, (1, 1), ((1, 1), (1, 1)),
                                 dimension_numbers=("NHWC", "HWIO", "NHWC"))
    return jnp.concatenate([y, x_nhwc], axis=-1)


if __name__ == "__main__":
    in_planes, growth_rate = 4, 4
    N, H, W = 2, 16, 16

    key = jax.random.PRNGKey(0)
    k_x, k_p = jax.random.split(key)
    # NHWC end-to-end (channels on the lane axis). In a full DenseNet the single
    # NCHW->NHWC conversion happens once at the network boundary, not per block.
    x_nhwc = jax.random.normal(k_x, (N, H, W, in_planes), jnp.float32)
    kernel_params, ref_params = make_params(k_p, in_planes, growth_rate)

    fwd = jax.jit(functools.partial(bottleneck_forward, params=kernel_params))
    out = jax.block_until_ready(fwd(x_nhwc))

    ref = reference_forward(x_nhwc, ref_params)
    assert out.shape == (N, H, W, growth_rate + in_planes), out.shape
    # bf16 matmul operands (f32 accumulation) -> loosened tolerance vs f32 reference.
    np.testing.assert_allclose(np.asarray(out), np.asarray(ref),
                               rtol=2e-2, atol=2e-2)
    print("KERNEL_OK")
</pallas_src>

<mosaic_0001>
module attributes {stable_mosaic.version = 11 : i64} {
  func.func @bottleneck_kernel(%arg0: i32, %arg1: memref<1x16x16x4xf32, #tpu.memory_space<vmem>>, %arg2: memref<1x4xf32, #tpu.memory_space<vmem>>, %arg3: memref<1x4xf32, #tpu.memory_space<vmem>>, %arg4: memref<4x16xbf16, #tpu.memory_space<vmem>>, %arg5: memref<1x16xf32, #tpu.memory_space<vmem>>, %arg6: memref<1x16xf32, #tpu.memory_space<vmem>>, %arg7: memref<3x48x4xbf16, #tpu.memory_space<vmem>>, %arg8: memref<1x16x16x8xf32, #tpu.memory_space<vmem>>) attributes {dimension_semantics = [#tpu.dimension_semantics<parallel>], iteration_bounds = array<i64: 2>, scalar_prefetch = 0 : i64, scratch_operands = 0 : i64, tpu.core_type = #tpu.core_type<tc>, window_params = [{transform_indices = @transform_0, window_bounds = array<i64: 1, 16, 16, 4>}, {pipeline_mode = #tpu.pipeline_mode<synchronous>, transform_indices = @transform_1, window_bounds = array<i64: 1, 4>}, {pipeline_mode = #tpu.pipeline_mode<synchronous>, transform_indices = @transform_2, window_bounds = array<i64: 1, 4>}, {pipeline_mode = #tpu.pipeline_mode<synchronous>, transform_indices = @transform_3, window_bounds = array<i64: 4, 16>}, {pipeline_mode = #tpu.pipeline_mode<synchronous>, transform_indices = @transform_4, window_bounds = array<i64: 1, 16>}, {pipeline_mode = #tpu.pipeline_mode<synchronous>, transform_indices = @transform_5, window_bounds = array<i64: 1, 16>}, {pipeline_mode = #tpu.pipeline_mode<synchronous>, transform_indices = @transform_6, window_bounds = array<i64: 3, 48, 4>}, {transform_indices = @transform_7, window_bounds = array<i64: 1, 16, 16, 8>}]} {
    %c0 = arith.constant 0 : index
    %c0_0 = arith.constant 0 : index
    %c0_1 = arith.constant 0 : index
    %c0_2 = arith.constant 0 : index
    %0 = vector.load %arg1[%c0, %c0_0, %c0_1, %c0_2] : memref<1x16x16x4xf32, #tpu.memory_space<vmem>>, vector<1x16x16x4xf32>
    %1 = vector.shape_cast %0 : vector<1x16x16x4xf32> to vector<16x16x4xf32>
    %c0_3 = arith.constant 0 : index
    %c0_4 = arith.constant 0 : index
    %2 = vector.load %arg2[%c0_3, %c0_4] : memref<1x4xf32, #tpu.memory_space<vmem>>, vector<1x4xf32>
    %3 = vector.shape_cast %2 : vector<1x4xf32> to vector<4xf32>
    %4 = vector.shape_cast %3 : vector<4xf32> to vector<1x1x4xf32>
    %5 = vector.broadcast %4 : vector<1x1x4xf32> to vector<16x16x4xf32>
    %6 = arith.mulf %1, %5 : vector<16x16x4xf32>
    %c0_5 = arith.constant 0 : index
    %c0_6 = arith.constant 0 : index
    %7 = vector.load %arg3[%c0_5, %c0_6] : memref<1x4xf32, #tpu.memory_space<vmem>>, vector<1x4xf32>
    %8 = vector.shape_cast %7 : vector<1x4xf32> to vector<4xf32>
    %9 = vector.shape_cast %8 : vector<4xf32> to vector<1x1x4xf32>
    %10 = vector.broadcast %9 : vector<1x1x4xf32> to vector<16x16x4xf32>
    %11 = arith.addf %6, %10 : vector<16x16x4xf32>
    %cst = arith.constant 0.000000e+00 : f32
    %12 = vector.broadcast %cst : f32 to vector<16x16x4xf32>
    %13 = arith.maximumf %11, %12 : vector<16x16x4xf32>
    %14 = vector.shape_cast %13 : vector<16x16x4xf32> to vector<256x4xf32>
    %15 = arith.truncf %14 : vector<256x4xf32> to vector<256x4xbf16>
    %c0_7 = arith.constant 0 : index
    %c0_8 = arith.constant 0 : index
    %16 = vector.load %arg4[%c0_7, %c0_8] : memref<4x16xbf16, #tpu.memory_space<vmem>>, vector<4x16xbf16>
    %cst_9 = arith.constant dense<0.000000e+00> : vector<256x16xf32>
    %17 = tpu.matmul %15, %16, %cst_9 {dimension_numbers = #tpu.dot_dimension_numbers<[1], [0], [0], [1], [0, 0, 1, 1], [], []>} : vector<256x4xbf16>, vector<4x16xbf16>, vector<256x16xf32> -> vector<256x16xf32>
    %c0_10 = arith.constant 0 : index
    %c0_11 = arith.constant 0 : index
    %18 = vector.load %arg5[%c0_10, %c0_11] : memref<1x16xf32, #tpu.memory_space<vmem>>, vector<1x16xf32>
    %19 = vector.broadcast %18 : vector<1x16xf32> to vector<256x16xf32>
    %20 = arith.mulf %17, %19 : vector<256x16xf32>
    %c0_12 = arith.constant 0 : index
    %c0_13 = arith.constant 0 : index
    %21 = vector.load %arg6[%c0_12, %c0_13] : memref<1x16xf32, #tpu.memory_space<vmem>>, vector<1x16xf32>
    %22 = vector.broadcast %21 : vector<1x16xf32> to vector<256x16xf32>
    %23 = arith.addf %20, %22 : vector<256x16xf32>
    %cst_14 = arith.constant 0.000000e+00 : f32
    %24 = vector.broadcast %cst_14 : f32 to vector<256x16xf32>
    %25 = arith.maximumf %23, %24 : vector<256x16xf32>
    %26 = vector.shape_cast %25 : vector<256x16xf32> to vector<16x16x16xf32>
    %27 = arith.truncf %26 : vector<16x16x16xf32> to vector<16x16x16xbf16>
    %cst_15 = arith.constant 0.000000e+00 : bf16
    %28 = vector.broadcast %cst_15 : bf16 to vector<16x1x16xbf16>
    %29 = vector.extract_strided_slice %27 {offsets = [0, 0, 0], sizes = [16, 15, 16], strides = [1, 1, 1]} : vector<16x16x16xbf16> to vector<16x15x16xbf16>
    %30 = tpu.concatenate %28, %29 in 1 : vector<16x1x16xbf16>, vector<16x15x16xbf16> -> vector<16x16x16xbf16>
    %31 = vector.extract_strided_slice %27 {offsets = [0, 1, 0], sizes = [16, 15, 16], strides = [1, 1, 1]} : vector<16x16x16xbf16> to vector<16x15x16xbf16>
    %32 = tpu.concatenate %31, %28 in 1 : vector<16x15x16xbf16>, vector<16x1x16xbf16> -> vector<16x16x16xbf16>
    %33 = tpu.concatenate %30, %27, %32 in 2 : vector<16x16x16xbf16>, vector<16x16x16xbf16>, vector<16x16x16xbf16> -> vector<16x16x48xbf16>
    %34 = vector.shape_cast %33 : vector<16x16x48xbf16> to vector<256x48xbf16>
    %c0_16 = arith.constant 0 : index
    %c0_17 = arith.constant 0 : index
    %c0_18 = arith.constant 0 : index
    %35 = vector.load %arg7[%c0_16, %c0_17, %c0_18] : memref<3x48x4xbf16, #tpu.memory_space<vmem>>, vector<1x48x4xbf16>
    %36 = vector.shape_cast %35 : vector<1x48x4xbf16> to vector<48x4xbf16>
    %cst_19 = arith.constant dense<0.000000e+00> : vector<256x4xf32>
    %37 = tpu.matmul %34, %36, %cst_19 {dimension_numbers = #tpu.dot_dimension_numbers<[1], [0], [0], [1], [0, 0, 1, 1], [], []>} : vector<256x48xbf16>, vector<48x4xbf16>, vector<256x4xf32> -> vector<256x4xf32>
    %38 = vector.shape_cast %37 : vector<256x4xf32> to vector<16x16x4xf32>
    %c1 = arith.constant 1 : index
    %c0_20 = arith.constant 0 : index
    %c0_21 = arith.constant 0 : index
    %39 = vector.load %arg7[%c1, %c0_20, %c0_21] : memref<3x48x4xbf16, #tpu.memory_space<vmem>>, vector<1x48x4xbf16>
    %40 = vector.shape_cast %39 : vector<1x48x4xbf16> to vector<48x4xbf16>
    %cst_22 = arith.constant dense<0.000000e+00> : vector<256x4xf32>
    %41 = tpu.matmul %34, %40, %cst_22 {dimension_numbers = #tpu.dot_dimension_numbers<[1], [0], [0], [1], [0, 0, 1, 1], [], []>} : vector<256x48xbf16>, vector<48x4xbf16>, vector<256x4xf32> -> vector<256x4xf32>
    %42 = vector.shape_cast %41 : vector<256x4xf32> to vector<16x16x4xf32>
    %c2 = arith.constant 2 : index
    %c0_23 = arith.constant 0 : index
    %c0_24 = arith.constant 0 : index
    %43 = vector.load %arg7[%c2, %c0_23, %c0_24] : memref<3x48x4xbf16, #tpu.memory_space<vmem>>, vector<1x48x4xbf16>
    %44 = vector.shape_cast %43 : vector<1x48x4xbf16> to vector<48x4xbf16>
    %cst_25 = arith.constant dense<0.000000e+00> : vector<256x4xf32>
    %45 = tpu.matmul %34, %44, %cst_25 {dimension_numbers = #tpu.dot_dimension_numbers<[1], [0], [0], [1], [0, 0, 1, 1], [], []>} : vector<256x48xbf16>, vector<48x4xbf16>, vector<256x4xf32> -> vector<256x4xf32>
    %46 = vector.shape_cast %45 : vector<256x4xf32> to vector<16x16x4xf32>
    %cst_26 = arith.constant 0.000000e+00 : f32
    %47 = vector.broadcast %cst_26 : f32 to vector<1x16x4xf32>
    %48 = vector.extract_strided_slice %38 {offsets = [0, 0, 0], sizes = [15, 16, 4], strides = [1, 1, 1]} : vector<16x16x4xf32> to vector<15x16x4xf32>
    %49 = tpu.concatenate %47, %48 in 0 : vector<1x16x4xf32>, vector<15x16x4xf32> -> vector<16x16x4xf32>
    %50 = arith.addf %42, %49 : vector<16x16x4xf32>
    %51 = vector.extract_strided_slice %46 {offsets = [1, 0, 0], sizes = [15, 16, 4], strides = [1, 1, 1]} : vector<16x16x4xf32> to vector<15x16x4xf32>
    %52 = tpu.concatenate %51, %47 in 0 : vector<15x16x4xf32>, vector<1x16x4xf32> -> vector<16x16x4xf32>
    %53 = arith.addf %50, %52 : vector<16x16x4xf32>
    %54 = tpu.concatenate %53, %1 in 2 : vector<16x16x4xf32>, vector<16x16x4xf32> -> vector<16x16x8xf32>
    %c0_27 = arith.constant 0 : index
    %c0_28 = arith.constant 0 : index
    %c0_29 = arith.constant 0 : index
    %c0_30 = arith.constant 0 : index
    %55 = vector.load %arg8[%c0_27, %c0_28, %c0_29, %c0_30] : memref<1x16x16x8xf32, #tpu.memory_space<vmem>>, vector<1x16x16x8xf32>
    %56 = vector.shape_cast %55 : vector<1x16x16x8xf32> to vector<16x16x8xf32>
    %57 = vector.shape_cast %54 : vector<16x16x8xf32> to vector<1x16x16x8xf32>
    tpu.vector_store %arg8[%c0_27, %c0_28, %c0_29, %c0_30], %57 {strides = array<i32>} : memref<1x16x16x8xf32, #tpu.memory_space<vmem>>, vector<1x16x16x8xf32>,
    return
  }
  func.func @transform_0(%arg0: i32) -> (i32, i32, i32, i32) {
    %c0_i32 = arith.constant 0 : i32
    %c0_i32_0 = arith.constant 0 : i32
    %c0_i32_1 = arith.constant 0 : i32
    %c0_i32_2 = arith.constant 0 : i32
    return %arg0, %c0_i32, %c0_i32_0, %c0_i32_1 : i32, i32, i32, i32
  }
  func.func @transform_1(%arg0: i32) -> (i32, i32) {
    %c0_i32 = arith.constant 0 : i32
    %c0_i32_0 = arith.constant 0 : i32
    %c0_i32_1 = arith.constant 0 : i32
    return %c0_i32, %c0_i32_0 : i32, i32
  }
  func.func @transform_2(%arg0: i32) -> (i32, i32) {
    %c0_i32 = arith.constant 0 : i32
    %c0_i32_0 = arith.constant 0 : i32
    %c0_i32_1 = arith.constant 0 : i32
    return %c0_i32, %c0_i32_0 : i32, i32
  }
  func.func @transform_3(%arg0: i32) -> (i32, i32) {
    %c0_i32 = arith.constant 0 : i32
    %c0_i32_0 = arith.constant 0 : i32
    %c0_i32_1 = arith.constant 0 : i32
    return %c0_i32, %c0_i32_0 : i32, i32
  }
  func.func @transform_4(%arg0: i32) -> (i32, i32) {
    %c0_i32 = arith.constant 0 : i32
    %c0_i32_0 = arith.constant 0 : i32
    %c0_i32_1 = arith.constant 0 : i32
    return %c0_i32, %c0_i32_0 : i32, i32
  }
  func.func @transform_5(%arg0: i32) -> (i32, i32) {
    %c0_i32 = arith.constant 0 : i32
    %c0_i32_0 = arith.constant 0 : i32
    %c0_i32_1 = arith.constant 0 : i32
    return %c0_i32, %c0_i32_0 : i32, i32
  }
  func.func @transform_6(%arg0: i32) -> (i32, i32, i32) {
    %c0_i32 = arith.constant 0 : i32
    %c0_i32_0 = arith.constant 0 : i32
    %c0_i32_1 = arith.constant 0 : i32
    %c0_i32_2 = arith.constant 0 : i32
    return %c0_i32, %c0_i32_0, %c0_i32_1 : i32, i32, i32
  }
  func.func @transform_7(%arg0: i32) -> (i32, i32, i32, i32) {
    %c0_i32 = arith.constant 0 : i32
    %c0_i32_0 = arith.constant 0 : i32
    %c0_i32_1 = arith.constant 0 : i32
    %c0_i32_2 = arith.constant 0 : i32
    return %arg0, %c0_i32, %c0_i32_0, %c0_i32_1 : i32, i32, i32, i32
  }
}

</mosaic_0001>

<bundles_post_ra>
// kernel: bottleneck_forward.1
= control target key start
LH: loop header
LB: loop body
LE: loop exit
PB: predicated region body
PF: predicated region fallthrough
CT: control target
= control target key end

     0   :  { %s2074_s24 = smov 0   ;;  %s2819_s0 = inlined_call_operand.vmem [shape: f32[2,16,16,4], index: 0, kind: input, shape index: {}]   ;;  %s2820_s1 = inlined_call_operand.vmem [shape: f32[1,4], index: 1, kind: input, shape index: {}]   ;;  %s2821_s2 = inlined_call_operand.vmem [shape: f32[1,4], index: 2, kind: input, shape index: {}]   ;;  %s2822_s3 = inlined_call_operand.vmem [shape: bf16[4,16], index: 3, kind: input, shape index: {}]   ;;  %s2823_s4 = inlined_call_operand.vmem [shape: f32[1,16], index: 4, kind: input, shape index: {}]   ;;  %s2824_s5 = inlined_call_operand.vmem [shape: f32[1,16], index: 5, kind: input, shape index: {}]   ;;  %s2825_s6 = inlined_call_operand.vmem [shape: bf16[3,48,4], index: 6, kind: input, shape index: {}]   ;;  %s2826_s7 = inlined_call_operand.vmem [shape: f32[2,16,16,8], index: 7, kind: output, shape index: {}]  }
   0x1 LB: > { %s1849_s25 = sadd.s32 4294967295, %s2029_s24   ;;  %p1853_p0 = scmp.ge.s32.totalorder %s2029_s24, 1  ;;  %s2029_s24 = sphi %s2074_s24, %s17_s24  }
   0x2   : > { %p237_p1 = scmp.lt.s32.totalorder %s2029_s24, 3 }
   0x4   : > { %p238_p2 = pnand %p1853_p0, %p237_p1 }
   0x5   : > { %p269_p3 = scmp.lt.s32.totalorder (!%p238_p2), %s1849_s25, 1  ;;  %s2031_s17 = smov (!%p238_p2), 16  }
   0x6   : > { %241 = sbr.rel (%p238_p2) target bundleno = 678 (0x2a6), region = 48  ;;  %s2032_s18 = smov (!%p238_p2), 32  }
   0x7   : > { %s2033_s20 = smov (!%p238_p2), 4  }
   0xb   : > { %v432_v0 = vld [vmem:[%s2822_s3] sm:$0x3]  ;;  %vm482_vm0 = vcmask 1041408   ;;  %s2832_s25 = smov (!%p269_p3, %s1849_s25), 1  ;;  %vm433_vm1 = vcmask 31744   ;;  %vm986_vm2 = vcmask 1047552  }
   0xc   : > { %v484_v1 = vsel %vm482_vm0, %v432_v0, 0  ;;  %v2090_v2 = vld [vmem:[%s2820_s1] ss:$0 sm:$0xff]  ;;  %s1972_s30 = sshll.u32 %s2832_s25, 8  ;;  %vm987_vm3 = vsmask.f32 7424 }
   0xd   : > { %493 = vmatpush.bf16.msra.mxu0 %v484_v1  ;;  %s2098_s10 = scalar_lea.vmem %s2819_s0, %s1972_s30  ;;  %v2103_v3 = vld [vmem:[%s2821_s2] ss:$0 sm:$0xff]  ;;  %vm2198_vm4 = vmand %vm986_vm2, %vm987_vm3  ;;  %vm919_vm5 = vcmask 1040384   ;;  %vm920_vm6 = vsmask.f32 256  ;;  %vm1085_vm8 = vcmask 130048  }
   0xe   : > { %v280_v4 = vld [vmem:[%s2098_s10] sm:$0xff]  ;;  %v281_v5 = vld [vmem:[%s2098_s10 + $0x8] sm:$0xff]  ;;  %v282_v12 = vld [vmem:[%s2098_s10 + $0x10] sm:$0xff]  ;;  %vm1134_vm9 = vcmask 261120   ;;  %vm1191_vm10 = vcmask 392192   ;;  %vm1761_vm11 = vcmask 64512  }
   0xf   : > { %v316_v6 = vmul.f32 %v2090_v2, %v280_v4  ;;  %v317_v7 = vmul.f32 %v2090_v2, %v281_v5  ;;  %v283_v13 = vld [vmem:[%s2098_s10 + $0x18] sm:$0xff]  ;;  %v318_v15 = vmul.f32 %v2090_v2, %v282_v12  ;;  %v284_v22 = vld [vmem:[%s2098_s10 + $0x20] sm:$0xff]  ;;  %v285_v23 = vld [vmem:[%s2098_s10 + $0x28] sm:$0xff] }
  0x10   : > { %v319_v16 = vmul.f32 %v2090_v2, %v283_v13  ;;  %v320_v24 = vmul.f32 %v2090_v2, %v284_v22  ;;  %v321_v25 = vmul.f32 %v2090_v2, %v285_v23  ;;  %v286_v31 = vld [vmem:[%s2098_s10 + $0x30] sm:$0xff]  ;;  %v287_v32 = vld [vmem:[%s2098_s10 + $0x38] sm:$0xff]  ;;  %v288_v40 = vld [vmem:[%s2098_s10 + $0x40] sm:$0xff] }
  0x11   : > { %v352_v8 = vadd.f32 %v2103_v3, %v316_v6  ;;  %v353_v9 = vadd.f32 %v2103_v3, %v317_v7  ;;  %v354_v17 = vadd.f32 %v2103_v3, %v318_v15  ;;  %v322_v33 = vmul.f32 %v2090_v2, %v286_v31  ;;  %v289_v41 = vld [vmem:[%s2098_s10 + $0x48] sm:$0xff]  ;;  %v290_v49 = vld [vmem:[%s2098_s10 + $0x50] sm:$0xff]  ;;  %v291_v50 = vld [vmem:[%s2098_s10 + $0x58] sm:$0xff] }
  0x12   : > { %v355_v18 = vadd.f32 %v2103_v3, %v319_v16  ;;  %v356_v26 = vadd.f32 %v2103_v3, %v320_v24  ;;  %v357_v27 = vadd.f32 %v2103_v3, %v321_v25  ;;  %v323_v34 = vmul.f32 %v2090_v2, %v287_v32  ;;  %v292_v58 = vld [vmem:[%s2098_s10 + $0x60] sm:$0xff]  ;;  %v293_v59 = vld [vmem:[%s2098_s10 + $0x68] sm:$0xff]  ;;  %v294_v5 = vld [vmem:[%s2098_s10 + $0x70] sm:$0xff] }
  0x13   : > { %v384_v10 = vmax.f32 %v352_v8, 0.0  ;;  %v385_v11 = vmax.f32 %v353_v9, 0.0  ;;  %v386_v19 = vmax.f32 %v354_v17, 0.0  ;;  %v358_v35 = vadd.f32 %v2103_v3, %v322_v33  ;;  %v295_v6 = vld [vmem:[%s2098_s10 + $0x78] sm:$0xff]  ;;  %v297_v15 = vld [vmem:[%s2098_s10 + $0x88] sm:$0xff]  ;;  %v298_v25 = vld [vmem:[%s2098_s10 + $0x90] sm:$0xff] }
  0x14   : > { %v387_v20 = vmax.f32 %v355_v18, 0.0  ;;  %v388_v28 = vmax.f32 %v356_v26, 0.0  ;;  %v389_v29 = vmax.f32 %v357_v27, 0.0  ;;  %v359_v36 = vadd.f32 %v2103_v3, %v323_v34  ;;  %v2170_v22 = vld [vmem:[%s2823_s4] ss:$0 sm:$0xff]  ;;  %v299_v26 = vld [vmem:[%s2098_s10 + $0x98] sm:$0xff]  ;;  %vm2359_vm7 = vmand %vm919_vm5, %vm920_vm6 }
  0x15   : > { %v416_v14 = vpack.c.bf16 %v385_v11, %v384_v10  ;;  %v390_v37 = vmax.f32 %v358_v35, 0.0  ;;  %v324_v42 = vmul.f32 %v2090_v2, %v288_v40  ;;  %v325_v43 = vmul.f32 %v2090_v2, %v289_v41 }
  0x16   : > { %v417_v21 = vpack.c.bf16 %v387_v20, %v386_v19  ;;  %v418_v30 = vpack.c.bf16 %v389_v29, %v388_v28  ;;  %v391_v38 = vmax.f32 %v359_v36, 0.0  ;;  %v326_v51 = vmul.f32 %v2090_v2, %v290_v49  ;;  %v2178_v28 = vld [vmem:[%s2824_s5] ss:$0 sm:$0xff] }
  0x17   : > { %1858 = vmatmul.msk.bf16.vlgmr.msra.gmra.mxu0 %vm433_vm1, %v416_v14  ;;  %v360_v44 = vadd.f32 %v2103_v3, %v324_v42  ;;  %v361_v45 = vadd.f32 %v2103_v3, %v325_v43  ;;  %v327_v52 = vmul.f32 %v2090_v2, %v291_v50  ;;  %v328_v60 = vmul.f32 %v2090_v2, %v292_v58  ;;  %v296_v14 = vld [vmem:[%s2098_s10 + $0x80] sm:$0xff] }
  0x18   : > { %v419_v39 = vpack.c.bf16 %v391_v38, %v390_v37  ;;  %v362_v53 = vadd.f32 %v2103_v3, %v326_v51  ;;  %v329_v61 = vmul.f32 %v2090_v2, %v293_v59  ;;  %v330_v7 = vmul.f32 %v2090_v2, %v294_v5 }
  0x19   : > { %v392_v46 = vmax.f32 %v360_v44, 0.0  ;;  %v393_v47 = vmax.f32 %v361_v45, 0.0  ;;  %v363_v54 = vadd.f32 %v2103_v3, %v327_v52  ;;  %v364_v62 = vadd.f32 %v2103_v3, %v328_v60  ;;  %v300_v45 = vld [vmem:[%s2098_s10 + $0xa0] sm:$0xff] }
  0x1a   : > { %v394_v55 = vmax.f32 %v362_v53, 0.0  ;;  %v365_v63 = vadd.f32 %v2103_v3, %v329_v61  ;;  %v331_v8 = vmul.f32 %v2090_v2, %v295_v6  ;;  %v366_v9 = vadd.f32 %v2103_v3, %v330_v7 }
  0x1b   : > { %v420_v48 = vpack.c.bf16 %v393_v47, %v392_v46  ;;  %v395_v56 = vmax.f32 %v363_v54, 0.0  ;;  %v396_v0 = vmax.f32 %v364_v62, 0.0  ;;  %v332_v16 = vmul.f32 %v2090_v2, %v296_v14  ;;  %v301_v46 = vld [vmem:[%s2098_s10 + $0xa8] sm:$0xff]  ;;  %v303_v14 = vld [vmem:[%s2098_s10 + $0xb8] sm:$0xff] }
  0x1c   : > { %v397_v1 = vmax.f32 %v365_v63, 0.0  ;;  %v367_v10 = vadd.f32 %v2103_v3, %v331_v8  ;;  %v398_v11 = vmax.f32 %v366_v9, 0.0  ;;  %v333_v17 = vmul.f32 %v2090_v2, %v297_v15 }
  0x1d   : > { %v421_v57 = vpack.c.bf16 %v395_v56, %v394_v55  ;;  %v368_v18 = vadd.f32 %v2103_v3, %v332_v16  ;;  %v334_v29 = vmul.f32 %v2090_v2, %v298_v25  ;;  %v336_v51 = vmul.f32 %v2090_v2, %v300_v45  ;;  %v305_v45 = vld [vmem:[%s2098_s10 + $0xc8] sm:$0xff] }
  0x1e   : > { %v422_v4 = vpack.c.bf16 %v397_v1, %v396_v0  ;;  %v399_v12 = vmax.f32 %v367_v10, 0.0  ;;  %v369_v19 = vadd.f32 %v2103_v3, %v333_v17  ;;  %v337_v52 = vmul.f32 %v2090_v2, %v301_v46 }
  0x1f   : > { %v400_v20 = vmax.f32 %v368_v18, 0.0  ;;  %v370_v32 = vadd.f32 %v2103_v3, %v334_v29  ;;  %v372_v58 = vadd.f32 %v2103_v3, %v336_v51  ;;  %v341_v51 = vmul.f32 %v2090_v2, %v305_v45 }
  0x20   : > { %v423_v13 = vpack.c.bf16 %v399_v12, %v398_v11  ;;  %v373_v59 = vadd.f32 %v2103_v3, %v337_v52 }
  0x21   : > { %v402_v38 = vmax.f32 %v370_v32, 0.0  ;;  %v404_v6 = vmax.f32 %v372_v58, 0.0  ;;  %v377_v58 = vadd.f32 %v2103_v3, %v341_v51 }
  0x22   : > { %v405_v7 = vmax.f32 %v373_v59, 0.0 }
  0x24   : > { %v426_v11 = vpack.c.bf16 %v405_v7, %v404_v6  ;;  %v409_v7 = vmax.f32 %v377_v58, 0.0 }
  0x27   : > { %1859 = vmatmul.msk.bf16.gmra.mxu0 %vm433_vm1, %v417_v21  ;;  %v401_v21 = vmax.f32 %v369_v19, 0.0 }
  0x29   : > { %v424_v23 = vpack.c.bf16 %v401_v21, %v400_v20  ;;  %v339_v20 = vmul.f32 %v2090_v2, %v303_v14  ;;  %v2250_v14 = vld [vmem:[%s2098_s10 + $0xd8] sm:$0xff] }
  0x2b   : > { %v375_v29 = vadd.f32 %v2103_v3, %v339_v20  ;;  %v343_v20 = vmul.f32 %v2090_v2, %v2250_v14 }
  0x37   : > { %1860 = vmatmul.msk.bf16.gmra.mxu0 %vm433_vm1, %v418_v30  ;;  %v335_v30 = vmul.f32 %v2090_v2, %v299_v26 }
  0x39   : > { %v371_v33 = vadd.f32 %v2103_v3, %v335_v30 }
  0x47   : > { %1861 = vmatmul.msk.bf16.gmra.mxu0 %vm433_vm1, %v419_v39  ;;  %v403_v39 = vmax.f32 %v371_v33, 0.0 }
  0x49   : > { %v425_v43 = vpack.c.bf16 %v403_v39, %v402_v38  ;;  %v407_v38 = vmax.f32 %v375_v29, 0.0  ;;  %v379_v29 = vadd.f32 %v2103_v3, %v343_v20 }
  0x57   : > { %1862 = vmatmul.msk.bf16.gmra.mxu0 %vm433_vm1, %v420_v48 }
  0x67   : > { %1863 = vmatmul.msk.bf16.gmra.mxu0 %vm433_vm1, %v421_v57 }
  0x77   : > { %1864 = vmatmul.msk.bf16.gmra.mxu0 %vm433_vm1, %v422_v4 }
  0x87   : > { %1865 = vmatmul.msk.bf16.gmra.mxu0 %vm433_vm1, %v423_v13  ;;  %v302_v13 = vld [vmem:[%s2098_s10 + $0xb0] sm:$0xff] }
  0x88   : > { %v338_v19 = vmul.f32 %v2090_v2, %v302_v13  ;;  %v2247_v13 = vld [vmem:[%s2098_s10 + $0xd0] sm:$0xff] }
  0x94   : > { %v495_v24 = vpop.f32.mrf.mxu0 }
  0x95   : > { %v579_v27 = vmul.f32 %v2170_v22, %v495_v24 }
  0x97   : > { %1866 = vmatmul.msk.bf16.gmra.mxu0 %vm433_vm1, %v424_v23  ;;  %v615_v31 = vadd.f32 %v2178_v28, %v579_v27  ;;  %v374_v27 = vadd.f32 %v2103_v3, %v338_v19  ;;  %v342_v19 = vmul.f32 %v2090_v2, %v2247_v13 }
  0x99   : > { %v647_v35 = vmax.f32 %v615_v31, 0.0 }
  0x9b   : > { %v679_v40 = vpack.c.bf16 %v647_v35, %v647_v35 }
  0x9c   : > { %v497_v34 = vpop.f32.mrf.mxu0 }
  0x9d   : > { %v580_v36 = vmul.f32 %v2170_v22, %v497_v34  ;;  %v743_v47 = vunpack.c.l.b16 %v679_v40 }
  0x9f   : > { %v616_v37 = vadd.f32 %v2178_v28, %v580_v36 }
  0xa1   : > { %v648_v41 = vmax.f32 %v616_v37, 0.0  ;;  %v406_v37 = vmax.f32 %v374_v27, 0.0  ;;  %v378_v27 = vadd.f32 %v2103_v3, %v342_v19  ;;  %v2296_v19 = vld [vmem:[%s2098_s10 + $0xf8] sm:$0xff] }
  0xa3   : > { %v680_v42 = vpack.c.bf16 %v648_v41, %v648_v41 }
  0xa4   : > { %v500_v44 = vpop.f32.mrf.mxu0 }
  0xa5   : > { %v744_v48 = vunpack.c.l.b16 %v680_v42  ;;  %v581_v49 = vmul.f32 %v2170_v22, %v500_v44  ;;  %v427_v42 = vpack.c.bf16 %v407_v38, %v406_v37  ;;  %v2227_v44 = vld [vmem:[%s2098_s10 + $0xc0] sm:$0xff]  ;;  %v410_v38 = vmax.f32 %v378_v27, 0.0  ;;  %v1976_v27 = vld [vmem:[%s2825_s6 + $0x10] sm:$0xff] }
  0xa6   : > { %1229 = vmatpush.bf16.msra.mxu1 %v1976_v27 }
  0xa7   : > { %1867 = vmatmul.msk.bf16.gmra.mxu0 %vm433_vm1, %v425_v43  ;;  %v775_v50 = vpack.c.b16 %v744_v48, %v743_v47  ;;  %v617_v53 = vadd.f32 %v2178_v28, %v581_v49 }
  0xa9   : > { %1005 = vrot.lane.b32.xlu0 %v775_v50, %s2031_s17  ;;  %v792_v54 = vshrl.u32 %v775_v50, 16  ;;  %v795_v55 = vshll.u32 %v775_v50, 16  ;;  %v649_v62 = vmax.f32 %v617_v53, 0.0  ;;  %v340_v50 = vmul.f32 %v2090_v2, %v2227_v44 }
  0xab   : > { %v938_v56 = vrot.slane %v795_v55, 1  ;;  %v794_v57 = vrot.slane %v792_v54, 7  ;;  %v681_v8 = vpack.c.bf16 %v649_v62, %v649_v62 }
  0xac   : > { %v502_v60 = vpop.f32.mrf.mxu0 }
  0xad   : > { %v582_v63 = vmul.f32 %v2170_v22, %v502_v60  ;;  %v939_v0 = vor.u32 %v938_v56, %v792_v54  ;;  %v2203_v1 = vor.u32 %v795_v55, %v794_v57  ;;  %v745_v15 = vunpack.c.l.b16 %v681_v8 }
  0xae   : > { %v376_v57 = vadd.f32 %v2103_v3, %v340_v50 }
  0xaf   : > { %v618_v4 = vadd.f32 %v2178_v28, %v582_v63  ;;  %v989_v5 = vsel %vm2198_vm4, %v939_v0, 0 }
  0xb0   : > { %v408_v6 = vmax.f32 %v376_v57, 0.0 }
  0xb1   : > { %v650_v9 = vmax.f32 %v618_v4, 0.0  ;;  %1053 = vrot.lane.b32.xlu0 %v989_v5, %s2032_s18 }
  0xb3   : > { %v682_v10 = vpack.c.bf16 %v650_v9, %v650_v9 }
  0xb4   : > { %v505_v12 = vpop.f32.mrf.mxu0 }
  0xb5   : > { %v746_v16 = vunpack.c.l.b16 %v682_v10  ;;  %v583_v17 = vmul.f32 %v2170_v22, %v505_v12 }
  0xb7   : > { %1868 = vmatmul.msk.bf16.gmra.mxu0 %vm433_vm1, %v426_v11  ;;  %v776_v18 = vpack.c.b16 %v746_v16, %v745_v15  ;;  %v619_v21 = vadd.f32 %v2178_v28, %v583_v17  ;;  %v428_v11 = vpack.c.bf16 %v409_v7, %v408_v6 }
  0xb9   : > { %1007 = vrot.lane.b32.xlu1 %v776_v18, %s2031_s17  ;;  %v799_v23 = vshrl.u32 %v776_v18, 16  ;;  %v802_v24 = vshll.u32 %v776_v18, 16  ;;  %v651_v31 = vmax.f32 %v619_v21, 0.0 }
  0xbb   : > { %v940_v25 = vrot.slane %v802_v24, 1  ;;  %v801_v26 = vrot.slane %v799_v23, 7  ;;  %v683_v39 = vpack.c.bf16 %v651_v31, %v651_v31 }
  0xbc   : > { %v507_v30 = vpop.f32.mrf.mxu0 }
  0xbd   : > { %v584_v32 = vmul.f32 %v2170_v22, %v507_v30  ;;  %v941_v33 = vor.u32 %v940_v25, %v799_v23  ;;  %v2220_v34 = vor.u32 %v802_v24, %v801_v26  ;;  %v747_v46 = vunpack.c.l.b16 %v683_v39 }
  0xbe   : > { %v411_v39 = vmax.f32 %v379_v29, 0.0  ;;  %v1979_v29 = vld [vmem:[%s2825_s6 + $0x28] sm:$0xff] }
  0xbf   : > { %v620_v35 = vadd.f32 %v2178_v28, %v584_v32  ;;  %v990_v36 = vsel %vm2198_vm4, %v941_v33, 0  ;;  %1341 = vmatpush.bf16.msra.mxu2 %v1979_v29 }
  0xc1   : > { %v652_v40 = vmax.f32 %v620_v35, 0.0  ;;  %1055 = vrot.lane.b32.xlu1 %v990_v36, %s2032_s18 }
  0xc3   : > { %v684_v41 = vpack.c.bf16 %v652_v40, %v652_v40 }
  0xc4   : > { %v510_v43 = vpop.f32.mrf.mxu0 }
  0xc5   : > { %v748_v47 = vunpack.c.l.b16 %v684_v41  ;;  %v585_v48 = vmul.f32 %v2170_v22, %v510_v43  ;;  %v429_v43 = vpack.c.bf16 %v411_v39, %v410_v38 }
  0xc7   : > { %1869 = vmatmul.msk.bf16.gmra.mxu0 %vm433_vm1, %v427_v42  ;;  %v777_v49 = vpack.c.b16 %v748_v47, %v747_v46  ;;  %v621_v52 = vadd.f32 %v2178_v28, %v585_v48  ;;  %v2270_v46 = vld [vmem:[%s2098_s10 + $0xe0] sm:$0xff]  ;;  %v2273_v47 = vld [vmem:[%s2098_s10 + $0xe8] sm:$0xff] }
  0xc9   : > { %1009 = vrot.lane.b32.xlu2 %v777_v49, %s2031_s17  ;;  %v806_v53 = vshrl.u32 %v777_v49, 16  ;;  %v809_v54 = vshll.u32 %v777_v49, 16  ;;  %v653_v60 = vmax.f32 %v621_v52, 0.0  ;;  %v344_v52 = vmul.f32 %v2090_v2, %v2270_v46 }
  0xcb   : > { %v942_v55 = vrot.slane %v809_v54, 1  ;;  %v808_v56 = vrot.slane %v806_v53, 7  ;;  %v685_v8 = vpack.c.bf16 %v653_v60, %v653_v60 }
  0xcc   : > { %v512_v59 = vpop.f32.mrf.mxu0 }
  0xcd   : > { %v586_v62 = vmul.f32 %v2170_v22, %v512_v59  ;;  %v943_v63 = vor.u32 %v942_v55, %v806_v53  ;;  %v2240_v0 = vor.u32 %v809_v54, %v808_v56  ;;  %v749_v15 = vunpack.c.l.b16 %v685_v8 }
  0xce   : > { %v345_v53 = vmul.f32 %v2090_v2, %v2273_v47  ;;  %v380_v59 = vadd.f32 %v2103_v3, %v344_v52 }
  0xcf   : > { %v622_v4 = vadd.f32 %v2178_v28, %v586_v62  ;;  %v991_v5 = vsel %vm2198_vm4, %v943_v63, 0 }
  0xd0   : > { %v381_v60 = vadd.f32 %v2103_v3, %v345_v53 }
  0xd1   : > { %v654_v9 = vmax.f32 %v622_v4, 0.0  ;;  %1057 = vrot.lane.b32.xlu2 %v991_v5, %s2032_s18 }
  0xd3   : > { %v686_v10 = vpack.c.bf16 %v654_v9, %v654_v9  ;;  %v412_v9 = vmax.f32 %v380_v59, 0.0 }
  0xd4   : > { %v515_v12 = vpop.f32.mrf.mxu0 }
  0xd5   : > { %v750_v16 = vunpack.c.l.b16 %v686_v10  ;;  %v587_v17 = vmul.f32 %v2170_v22, %v515_v12  ;;  %v413_v10 = vmax.f32 %v381_v60, 0.0 }
  0xd7   : > { %1870 = vmatmul.msk.bf16.gmra.mxu0 %vm433_vm1, %v428_v11  ;;  %v778_v18 = vpack.c.b16 %v750_v16, %v749_v15  ;;  %v623_v21 = vadd.f32 %v2178_v28, %v587_v17  ;;  %v430_v16 = vpack.c.bf16 %v413_v10, %v412_v9 }
  0xd9   : > { %1011 = vrot.lane.b32.xlu0 %v778_v18, %s2031_s17  ;;  %v813_v23 = vshrl.u32 %v778_v18, 16  ;;  %v816_v24 = vshll.u32 %v778_v18, 16  ;;  %v655_v31 = vmax.f32 %v623_v21, 0.0  ;;  %v2293_v18 = vld [vmem:[%s2098_s10 + $0xf0] sm:$0xff] }
  0xdb   : > { %v944_v25 = vrot.slane %v816_v24, 1  ;;  %v815_v26 = vrot.slane %v813_v23, 7  ;;  %v687_v40 = vpack.c.bf16 %v655_v31, %v655_v31 }
  0xdc   : > { %v517_v30 = vpop.f32.mrf.mxu0 }
  0xdd   : > { %v588_v32 = vmul.f32 %v2170_v22, %v517_v30  ;;  %v945_v33 = vor.u32 %v944_v25, %v813_v23  ;;  %v2263_v35 = vor.u32 %v816_v24, %v815_v26  ;;  %v751_v48 = vunpack.c.l.b16 %v687_v40  ;;  %v1982_v30 = vld [vmem:[%s2825_s6 + $0x40] sm:$0xff] }
  0xde   : > { %v346_v25 = vmul.f32 %v2090_v2, %v2293_v18  ;;  %v347_v26 = vmul.f32 %v2090_v2, %v2296_v19  ;;  %1455 = vmatpush.bf16.msra.mxu3 %v1982_v30 }
  0xdf   : > { %v624_v36 = vadd.f32 %v2178_v28, %v588_v32  ;;  %v992_v37 = vsel %vm2198_vm4, %v945_v33, 0 }
  0xe0   : > { %1059 = vrot.lane.b32.xlu1 %v992_v37, %s2032_s18  ;;  %v382_v37 = vadd.f32 %v2103_v3, %v346_v25  ;;  %v383_v38 = vadd.f32 %v2103_v3, %v347_v26 }
  0xe1   : > { %v656_v41 = vmax.f32 %v624_v36, 0.0 }
  0xe2   : > { %v415_v52 = vmax.f32 %v383_v38, 0.0 }
  0xe3   : > { %v688_v42 = vpack.c.bf16 %v656_v41, %v656_v41 }
  0xe4   : > { %v520_v45 = vpop.f32.mrf.mxu0 }
  0xe5   : > { %v752_v49 = vunpack.c.l.b16 %v688_v42  ;;  %v589_v50 = vmul.f32 %v2170_v22, %v520_v45  ;;  %v1978_v45 = vld [vmem:[%s2825_s6 + $0x20] sm:$0xff] }
  0xe6   : > { %1342 = vmatpush.bf16.msra.mxu2 %v1978_v45 }
  0xe7   : > { %1871 = vmatmul.msk.bf16.gmra.mxu0 %vm433_vm1, %v429_v43  ;;  %v779_v51 = vpack.c.b16 %v752_v49, %v751_v48  ;;  %v625_v54 = vadd.f32 %v2178_v28, %v589_v50  ;;  %v1975_v43 = vld [vmem:[%s2825_s6 + $0x8] sm:$0xff]  ;;  %v1981_v48 = vld [vmem:[%s2825_s6 + $0x38] sm:$0xff] }
  0xe8   : > { %1230 = vmatpush.bf16.msra.mxu1 %v1975_v43  ;;  %1456 = vmatpush.bf16.msra.mxu3 %v1981_v48 }
  0xe9   : > { %1013 = vrot.lane.b32.xlu2 %v779_v51, %s2031_s17  ;;  %v820_v55 = vshrl.u32 %v779_v51, 16  ;;  %v823_v56 = vshll.u32 %v779_v51, 16  ;;  %v657_v63 = vmax.f32 %v625_v54, 0.0  ;;  %v414_v51 = vmax.f32 %v382_v37, 0.0 }
  0xeb   : > { %v946_v57 = vrot.slane %v823_v56, 1  ;;  %v822_v58 = vrot.slane %v820_v55, 7  ;;  %v689_v11 = vpack.c.bf16 %v657_v63, %v657_v63  ;;  %v431_v59 = vpack.c.bf16 %v415_v52, %v414_v51 }
  0xec   : > { %v522_v62 = vpop.f32.mrf.mxu0 }
  0xed   : > { %v590_v4 = vmul.f32 %v2170_v22, %v522_v62  ;;  %v947_v5 = vor.u32 %v946_v57, %v820_v55  ;;  %v2286_v6 = vor.u32 %v823_v56, %v822_v58  ;;  %v753_v20 = vunpack.c.l.b16 %v689_v11  ;;  %v1974_v55 = vld [vmem:[%s2825_s6] sm:$0xff]  ;;  %v1977_v56 = vld [vmem:[%s2825_s6 + $0x18] sm:$0xff]  ;;  %v1980_v57 = vld [vmem:[%s2825_s6 + $0x30] sm:$0xff] }
  0xee   : > { %1231 = vmatpush.bf16.msra.mxu1 %v1974_v55  ;;  %1343 = vmatpush.bf16.msra.mxu2 %v1977_v56 }
  0xef   : > { %v626_v7 = vadd.f32 %v2178_v28, %v590_v4  ;;  %v993_v8 = vsel %vm2198_vm4, %v947_v5, 0  ;;  %1457 = vmatpush.bf16.msra.mxu3 %v1980_v57 }
  0xf0   : > { %1061 = vrot.lane.b32.xlu0 %v993_v8, %s2032_s18 }
  0xf1   : > { %v658_v12 = vmax.f32 %v626_v7, 0.0 }
  0xf3   : > { %v690_v15 = vpack.c.bf16 %v658_v12, %v658_v12 }
  0xf4   : > { %v525_v17 = vpop.f32.mrf.mxu0 }
  0xf5   : > { %v754_v21 = vunpack.c.l.b16 %v690_v15  ;;  %v591_v23 = vmul.f32 %v2170_v22, %v525_v17 }
  0xf7   : > { %1872 = vmatmul.msk.bf16.gmra.mxu0 %vm433_vm1, %v430_v16  ;;  %v780_v24 = vpack.c.b16 %v754_v21, %v753_v20  ;;  %v627_v31 = vadd.f32 %v2178_v28, %v591_v23 }
  0xf9   : > { %1015 = vrot.lane.b32.xlu1 %v780_v24, %s2031_s17  ;;  %v827_v32 = vshrl.u32 %v780_v24, 16  ;;  %v830_v33 = vshll.u32 %v780_v24, 16  ;;  %v659_v40 = vmax.f32 %v627_v31, 0.0 }
  0xfb   : > { %v948_v2 = vrot.slane %v830_v33, 1  ;;  %v829_v36 = vrot.slane %v827_v32, 7  ;;  %v691_v53 = vpack.c.bf16 %v659_v40, %v659_v40 }
  0xfc   : > { %v527_v39 = vpop.f32.mrf.mxu0 }
  0xfd   : > { %v592_v41 = vmul.f32 %v2170_v22, %v527_v39  ;;  %v949_v42 = vor.u32 %v948_v2, %v827_v32  ;;  %v2327_v49 = vor.u32 %v830_v33, %v829_v36  ;;  %v755_v62 = vunpack.c.l.b16 %v691_v53 }
  0xfe   : > { %v922_v53 = vsel %vm2359_vm7, 0, %v2203_v1 }
  0xff   : > { %v628_v3 = vadd.f32 %v2178_v28, %v592_v41  ;;  %v994_v50 = vsel %vm2198_vm4, %v949_v42, 0 }
 0x100   : > { %1063 = vrot.lane.b32.xlu2 %v994_v50, %s2032_s18 }
 0x101   : > { %v660_v54 = vmax.f32 %v628_v3, 0.0 }
 0x103   : > { %v692_v58 = vpack.c.bf16 %v660_v54, %v660_v54 }
 0x104   : > { %v530_v60 = vpop.f32.mrf.mxu0 }
 0x105   : > { %v756_v63 = vunpack.c.l.b16 %v692_v58  ;;  %v593_v4 = vmul.f32 %v2170_v22, %v530_v60 }
 0x107   : > { %1873 = vmatmul.msk.bf16.gmra.mxu0 %vm433_vm1, %v431_v59  ;;  %v781_v5 = vpack.c.b16 %v756_v63, %v755_v62  ;;  %v629_v7 = vadd.f32 %v2178_v28, %v593_v4 }
 0x109   : > { %1017 = vrot.lane.b32.xlu0 %v781_v5, %s2031_s17  ;;  %v834_v8 = vshrl.u32 %v781_v5, 16  ;;  %v837_v9 = vshll.u32 %v781_v5, 16  ;;  %v661_v15 = vmax.f32 %v629_v7, 0.0 }
 0x10b   : > { %v950_v10 = vrot.slane %v837_v9, 1  ;;  %v836_v11 = vrot.slane %v834_v8, 7  ;;  %v693_v24 = vpack.c.bf16 %v661_v15, %v661_v15 }
 0x10c   : > { %v532_v12 = vpop.f32.mrf.mxu0 }
 0x10d   : > { %v594_v16 = vmul.f32 %v2170_v22, %v532_v12  ;;  %v951_v17 = vor.u32 %v950_v10, %v834_v8  ;;  %v2347_v20 = vor.u32 %v837_v9, %v836_v11  ;;  %v757_v29 = vunpack.c.l.b16 %v693_v24 }
 0x10f   : > { %v630_v21 = vadd.f32 %v2178_v28, %v594_v16  ;;  %v995_v23 = vsel %vm2198_vm4, %v951_v17, 0 }
 0x110   : > { %1065 = vrot.lane.b32.xlu1 %v995_v23, %s2032_s18 }
 0x111   : > { %v662_v25 = vmax.f32 %v630_v21, 0.0 }
 0x113   : > { %v694_v26 = vpack.c.bf16 %v662_v25, %v662_v25  ;;  %v923_v25 = vsel %vm2359_vm7, 0, %v2220_v34 }
 0x114   : > { %v535_v27 = vpop.f32.mrf.mxu0 }
 0x115   : > { %v758_v30 = vunpack.c.l.b16 %v694_v26  ;;  %v595_v31 = vmul.f32 %v2170_v22, %v535_v27 }
 0x117   : > { %v782_v32 = vpack.c.b16 %v758_v30, %v757_v29  ;;  %v631_v33 = vadd.f32 %v2178_v28, %v595_v31 }
 0x119   : > { %1019 = vrot.lane.b32.xlu2 %v782_v32, %s2031_s17  ;;  %v841_v2 = vshrl.u32 %v782_v32, 16  ;;  %v844_v36 = vshll.u32 %v782_v32, 16  ;;  %v663_v41 = vmax.f32 %v631_v33, 0.0 }
 0x11b   : > { %v1006_v37 = vpop.permute.xlu0 %1005  ;;  %v952_v38 = vrot.slane %v844_v36, 1  ;;  %v843_v39 = vrot.slane %v841_v2, 7  ;;  %v695_v51 = vpack.c.bf16 %v663_v41, %v663_v41 }
 0x11c   : > { %v537_v40 = vpop.f32.mrf.mxu0  ;;  %v1088_v54 = vsel %vm1085_vm8, %v922_v53, %v1006_v37 }
 0x11d   : > { %v596_v42 = vmul.f32 %v2170_v22, %v537_v40  ;;  %v953_v43 = vor.u32 %v952_v38, %v841_v2  ;;  %v2357_v45 = vor.u32 %v844_v36, %v843_v39  ;;  %v759_v59 = vunpack.c.l.b16 %v695_v51 }
 0x11f   : > { %v632_v3 = vadd.f32 %v2178_v28, %v596_v42  ;;  %v996_v50 = vsel %vm2198_vm4, %v953_v43, 0 }
 0x120   : > { %1067 = vrot.lane.b32.xlu0 %v996_v50, %s2032_s18 }
 0x121   : > { %v664_v52 = vmax.f32 %v632_v3, 0.0 }
 0x123   : > { %v696_v55 = vpack.c.bf16 %v664_v52, %v664_v52  ;;  %v1054_v56 = vpop.permute.xlu0 %1053  ;;  %v1010_v36 = vpop.permute.xlu2 %1009 }
 0x124   : > { %v540_v57 = vpop.f32.mrf.mxu0  ;;  %v1136_v58 = vsel %vm1134_vm9, %v1088_v54, %v1054_v56 }
 0x125   : > { %v760_v60 = vunpack.c.l.b16 %v696_v55  ;;  %v597_v62 = vmul.f32 %v2170_v22, %v540_v57  ;;  %1886 = vmatmul.msk.bf16.vlgmr.msra.gmra.mxu1 %vm1191_vm10, %v1136_v58  ;;  %1920 = vmatmul.msk.bf16.vlgmr.msra.gmra.mxu2 %vm1191_vm10, %v1136_v58  ;;  %v924_v57 = vsel %vm2359_vm7, 0, %v2240_v0 }
 0x126   : > { %1954 = vmatmul.msk.bf16.vlgmr.msra.gmra.mxu3 %vm1191_vm10, %v1136_v58  ;;  %v1094_v58 = vsel %vm1085_vm8, %v924_v57, %v1010_v36  ;;  %v926_v57 = vsel %vm2359_vm7, 0, %v2286_v6 }
 0x127   : > { %v783_v63 = vpack.c.b16 %v760_v60, %v759_v59  ;;  %v633_v1 = vadd.f32 %v2178_v28, %v597_v62 }
 0x129   : > { %1021 = vrot.lane.b32.xlu1 %v783_v63, %s2031_s17  ;;  %v848_v4 = vshrl.u32 %v783_v63, 16  ;;  %v851_v5 = vshll.u32 %v783_v63, 16  ;;  %v665_v11 = vmax.f32 %v633_v1, 0.0 }
 0x12b   : > { %v1008_v7 = vpop.permute.xlu1 %1007  ;;  %v954_v8 = vrot.slane %v851_v5, 1  ;;  %v850_v9 = vrot.slane %v848_v4, 7  ;;  %v697_v23 = vpack.c.bf16 %v665_v11, %v665_v11  ;;  %v1058_v54 = vpop.permute.xlu2 %1057 }
 0x12c   : > { %v542_v10 = vpop.f32.mrf.mxu0  ;;  %v1091_v26 = vsel %vm1085_vm8, %v923_v25, %v1008_v7  ;;  %v1140_v62 = vsel %vm1134_vm9, %v1094_v58, %v1058_v54 }
 0x12d   : > { %v598_v12 = vmul.f32 %v2170_v22, %v542_v10  ;;  %v955_v15 = vor.u32 %v954_v8, %v848_v4  ;;  %v2379_v16 = vor.u32 %v851_v5, %v850_v9  ;;  %v761_v32 = vunpack.c.l.b16 %v697_v23 }
 0x12f   : > { %v634_v17 = vadd.f32 %v2178_v28, %v598_v12  ;;  %v997_v21 = vsel %vm2198_vm4, %v955_v15, 0 }
 0x130   : > { %1069 = vrot.lane.b32.xlu2 %v997_v21, %s2032_s18 }
 0x131   : > { %v666_v24 = vmax.f32 %v634_v17, 0.0 }
 0x133   : > { %v698_v27 = vpack.c.bf16 %v666_v24, %v666_v24  ;;  %v1056_v29 = vpop.permute.xlu1 %1055 }
 0x134   : > { %v545_v30 = vpop.f32.mrf.mxu0  ;;  %v1138_v31 = vsel %vm1134_vm9, %v1091_v26, %v1056_v29 }
 0x135   : > { %v762_v33 = vunpack.c.l.b16 %v698_v27  ;;  %v599_v2 = vmul.f32 %v2170_v22, %v545_v30  ;;  %1887 = vmatmul.msk.bf16.gmra.mxu1 %vm1191_vm10, %v1138_v31  ;;  %1921 = vmatmul.msk.bf16.gmra.mxu2 %vm1191_vm10, %v1138_v31  ;;  %v925_v27 = vsel %vm2359_vm7, 0, %v2263_v35 }
 0x136   : > { %1955 = vmatmul.msk.bf16.gmra.mxu3 %vm1191_vm10, %v1138_v31 }
 0x137   : > { %v784_v37 = vpack.c.b16 %v762_v33, %v761_v32  ;;  %v635_v34 = vadd.f32 %v2178_v28, %v599_v2 }
 0x139   : > { %1023 = vrot.lane.b32.xlu0 %v784_v37, %s2031_s17  ;;  %v855_v38 = vshrl.u32 %v784_v37, 16  ;;  %v858_v39 = vshll.u32 %v784_v37, 16  ;;  %v667_v43 = vmax.f32 %v635_v34, 0.0 }
 0x13b   : > { %v956_v40 = vrot.slane %v858_v39, 1  ;;  %v857_v41 = vrot.slane %v855_v38, 7  ;;  %v699_v55 = vpack.c.bf16 %v667_v43, %v667_v43 }
 0x13c   : > { %v547_v42 = vpop.f32.mrf.mxu0 }
 0x13d   : > { %v600_v3 = vmul.f32 %v2170_v22, %v547_v42  ;;  %v957_v50 = vor.u32 %v956_v40, %v855_v38  ;;  %v2397_v51 = vor.u32 %v858_v39, %v857_v41  ;;  %v763_v63 = vunpack.c.l.b16 %v699_v55 }
 0x13f   : > { %v636_v52 = vadd.f32 %v2178_v28, %v600_v3  ;;  %v998_v53 = vsel %vm2198_vm4, %v957_v50, 0 }
 0x140   : > { %1071 = vrot.lane.b32.xlu1 %v998_v53, %s2032_s18 }
 0x141   : > { %v668_v56 = vmax.f32 %v636_v52, 0.0 }
 0x143   : > { %v700_v59 = vpack.c.bf16 %v668_v56, %v668_v56  ;;  %v1014_v54 = vpop.permute.xlu2 %1013 }
 0x144   : > { %v550_v60 = vpop.f32.mrf.mxu0 }
 0x145   : > { %v764_v1 = vunpack.c.l.b16 %v700_v59  ;;  %v601_v4 = vmul.f32 %v2170_v22, %v550_v60  ;;  %1888 = vmatmul.msk.bf16.gmra.mxu1 %vm1191_vm10, %v1140_v62  ;;  %1922 = vmatmul.msk.bf16.gmra.mxu2 %vm1191_vm10, %v1140_v62  ;;  %v1100_v60 = vsel %vm1085_vm8, %v926_v57, %v1014_v54 }
 0x146   : > { %1956 = vmatmul.msk.bf16.gmra.mxu3 %vm1191_vm10, %v1140_v62 }
 0x147   : > { %v785_v5 = vpack.c.b16 %v764_v1, %v763_v63  ;;  %v637_v7 = vadd.f32 %v2178_v28, %v601_v4 }
 0x149   : > { %1025 = vrot.lane.b32.xlu2 %v785_v5, %s2031_s17  ;;  %v862_v0 = vshrl.u32 %v785_v5, 16  ;;  %v865_v8 = vshll.u32 %v785_v5, 16  ;;  %v669_v12 = vmax.f32 %v637_v7, 0.0 }
 0x14b   : > { %v958_v9 = vrot.slane %v865_v8, 1  ;;  %v864_v10 = vrot.slane %v862_v0, 7  ;;  %v1012_v23 = vpop.permute.xlu0 %1011  ;;  %v701_v26 = vpack.c.bf16 %v669_v12, %v669_v12 }
 0x14c   : > { %v552_v11 = vpop.f32.mrf.mxu0  ;;  %v1097_v30 = vsel %vm1085_vm8, %v925_v27, %v1012_v23 }
 0x14d   : > { %v602_v15 = vmul.f32 %v2170_v22, %v552_v11  ;;  %v959_v17 = vor.u32 %v958_v9, %v862_v0  ;;  %v2415_v21 = vor.u32 %v865_v8, %v864_v10  ;;  %v765_v36 = vunpack.c.l.b16 %v701_v26 }
 0x14f   : > { %v638_v24 = vadd.f32 %v2178_v28, %v602_v15  ;;  %v999_v25 = vsel %vm2198_vm4, %v959_v17, 0 }
 0x150   : > { %1073 = vrot.lane.b32.xlu0 %v999_v25, %s2032_s18 }
 0x151   : > { %v670_v29 = vmax.f32 %v638_v24, 0.0 }
 0x152   : > { %v1060_v31 = vpop.permute.xlu1 %1059 }
 0x153   : > { %v702_v32 = vpack.c.bf16 %v670_v29, %v670_v29  ;;  %v1142_v33 = vsel %vm1134_vm9, %v1097_v30, %v1060_v31  ;;  %v927_v30 = vsel %vm2359_vm7, 0, %v2327_v49 }
 0x154   : > { %v555_v2 = vpop.f32.mrf.mxu0 }
 0x155   : > { %v766_v37 = vunpack.c.l.b16 %v702_v32  ;;  %v603_v34 = vmul.f32 %v2170_v22, %v555_v2  ;;  %1889 = vmatmul.msk.bf16.gmra.mxu1 %vm1191_vm10, %v1142_v33  ;;  %1923 = vmatmul.msk.bf16.gmra.mxu2 %vm1191_vm10, %v1142_v33 }
 0x156   : > { %1957 = vmatmul.msk.bf16.gmra.mxu3 %vm1191_vm10, %v1142_v33 }
 0x157   : > { %v786_v38 = vpack.c.b16 %v766_v37, %v765_v36  ;;  %v639_v35 = vadd.f32 %v2178_v28, %v603_v34 }
 0x159   : > { %1027 = vrot.lane.b32.xlu1 %v786_v38, %s2031_s17  ;;  %v869_v39 = vshrl.u32 %v786_v38, 16  ;;  %v872_v40 = vshll.u32 %v786_v38, 16  ;;  %v671_v3 = vmax.f32 %v639_v35, 0.0 }
 0x15a   : > { %v1064_v2 = vpop.permute.xlu2 %1063 }
 0x15b   : > { %v960_v41 = vrot.slane %v872_v40, 1  ;;  %v871_v42 = vrot.slane %v869_v39, 7  ;;  %v703_v58 = vpack.c.bf16 %v671_v3, %v671_v3 }
 0x15c   : > { %v557_v43 = vpop.f32.mrf.mxu0 }
 0x15d   : > { %v604_v50 = vmul.f32 %v2170_v22, %v557_v43  ;;  %v961_v52 = vor.u32 %v960_v41, %v869_v39  ;;  %v2433_v53 = vor.u32 %v872_v40, %v871_v42  ;;  %v767_v5 = vunpack.c.l.b16 %v703_v58 }
 0x15f   : > { %v640_v55 = vadd.f32 %v2178_v28, %v604_v50  ;;  %v1000_v56 = vsel %vm2198_vm4, %v961_v52, 0 }
 0x160   : > { %1075 = vrot.lane.b32.xlu2 %v1000_v56, %s2032_s18 }
 0x161   : > { %v672_v59 = vmax.f32 %v640_v55, 0.0 }
 0x162   : > { %v1062_v62 = vpop.permute.xlu0 %1061 }
 0x163   : > { %v704_v63 = vpack.c.bf16 %v672_v59, %v672_v59  ;;  %v1144_v1 = vsel %vm1134_vm9, %v1100_v60, %v1062_v62  ;;  %v928_v62 = vsel %vm2359_vm7, 0, %v2347_v20 }
 0x164   : > { %v560_v4 = vpop.f32.mrf.mxu0 }
 0x165   : > { %v768_v7 = vunpack.c.l.b16 %v704_v63  ;;  %v605_v0 = vmul.f32 %v2170_v22, %v560_v4  ;;  %1890 = vmatmul.msk.bf16.gmra.mxu1 %vm1191_vm10, %v1144_v1  ;;  %1924 = vmatmul.msk.bf16.gmra.mxu2 %vm1191_vm10, %v1144_v1 }
 0x166   : > { %1958 = vmatmul.msk.bf16.gmra.mxu3 %vm1191_vm10, %v1144_v1 }
 0x167   : > { %v787_v6 = vpack.c.b16 %v768_v7, %v767_v5  ;;  %v641_v8 = vadd.f32 %v2178_v28, %v605_v0 }
 0x169   : > { %1029 = vrot.lane.b32.xlu0 %v787_v6, %s2031_s17  ;;  %v876_v9 = vshrl.u32 %v787_v6, 16  ;;  %v879_v10 = vshll.u32 %v787_v6, 16  ;;  %v673_v17 = vmax.f32 %v641_v8, 0.0 }
 0x16b   : > { %v962_v11 = vrot.slane %v879_v10, 1  ;;  %v878_v12 = vrot.slane %v876_v9, 7  ;;  %v1016_v25 = vpop.permute.xlu1 %1015  ;;  %v705_v31 = vpack.c.bf16 %v673_v17, %v673_v17 }
 0x16c   : > { %v562_v15 = vpop.f32.mrf.mxu0  ;;  %v1103_v32 = vsel %vm1085_vm8, %v927_v30, %v1016_v25 }
 0x16d   : > { %v606_v23 = vmul.f32 %v2170_v22, %v562_v15  ;;  %v963_v24 = vor.u32 %v962_v11, %v876_v9  ;;  %v2451_v26 = vor.u32 %v879_v10, %v878_v12  ;;  %v1146_v34 = vsel %vm1134_vm9, %v1103_v32, %v1064_v2 }
 0x16e   : > { %v769_v38 = vunpack.c.l.b16 %v705_v31 }
 0x16f   : > { %v642_v27 = vadd.f32 %v2178_v28, %v606_v23  ;;  %v1001_v29 = vsel %vm2198_vm4, %v963_v24, 0 }
 0x170   : > { %1077 = vrot.lane.b32.xlu1 %v1001_v29, %s2032_s18 }
 0x171   : > { %v674_v33 = vmax.f32 %v642_v27, 0.0 }
 0x173   : > { %v706_v36 = vpack.c.bf16 %v674_v33, %v674_v33  ;;  %v1020_v30 = vpop.permute.xlu2 %1019  ;;  %v929_v33 = vsel %vm2359_vm7, 0, %v2357_v45 }
 0x174   : > { %v565_v37 = vpop.f32.mrf.mxu0 }
 0x175   : > { %v770_v35 = vunpack.c.l.b16 %v706_v36  ;;  %v607_v39 = vmul.f32 %v2170_v22, %v565_v37  ;;  %1891 = vmatmul.msk.bf16.gmra.mxu1 %vm1191_vm10, %v1146_v34  ;;  %1925 = vmatmul.msk.bf16.gmra.mxu2 %vm1191_vm10, %v1146_v34 }
 0x176   : > { %1959 = vmatmul.msk.bf16.gmra.mxu3 %vm1191_vm10, %v1146_v34 }
 0x177   : > { %v788_v49 = vpack.c.b16 %v770_v35, %v769_v38  ;;  %v643_v40 = vadd.f32 %v2178_v28, %v607_v39 }
 0x179   : > { %1031 = vrot.lane.b32.xlu2 %v788_v49, %s2031_s17  ;;  %v883_v41 = vshrl.u32 %v788_v49, 16  ;;  %v886_v42 = vshll.u32 %v788_v49, 16  ;;  %v675_v52 = vmax.f32 %v643_v40, 0.0  ;;  %v1998_v49 = vld [vmem:[%s2098_s10] sm:$0xff] }
 0x17b   : > { %v964_v43 = vrot.slane %v886_v42, 1  ;;  %v885_v3 = vrot.slane %v883_v41, 7  ;;  %v1018_v57 = vpop.permute.xlu0 %1017  ;;  %v707_v60 = vpack.c.bf16 %v675_v52, %v675_v52 }
 0x17c   : > { %v567_v50 = vpop.f32.mrf.mxu0  ;;  %v1106_v1 = vsel %vm1085_vm8, %v928_v62, %v1018_v57  ;;  %v2001_v62 = vld [vmem:[%s2098_s10 + $0x30] sm:$0xff] }
 0x17d   : > { %v608_v54 = vmul.f32 %v2170_v22, %v567_v50  ;;  %v965_v55 = vor.u32 %v964_v43, %v883_v41  ;;  %v2469_v56 = vor.u32 %v886_v42, %v885_v3  ;;  %v771_v6 = vunpack.c.l.b16 %v707_v60 }
 0x17f   : > { %v644_v58 = vadd.f32 %v2178_v28, %v608_v54  ;;  %v1002_v59 = vsel %vm2198_vm4, %v965_v55, 0  ;;  %v930_v54 = vsel %vm2359_vm7, 0, %v2379_v16  ;;  %v1999_v55 = vld [vmem:[%s2098_s10 + $0x18] sm:$0xff] }
 0x180   : > { %1079 = vrot.lane.b32.xlu0 %v1002_v59, %s2032_s18 }
 0x181   : > { %v676_v63 = vmax.f32 %v644_v58, 0.0  ;;  %v2000_v58 = vld [vmem:[%s2098_s10 + $0x8] sm:$0xff] }
 0x182   : > { %v1066_v4 = vpop.permute.xlu1 %1065 }
 0x183   : > { %v708_v5 = vpack.c.bf16 %v676_v63, %v676_v63  ;;  %v1148_v7 = vsel %vm1134_vm9, %v1106_v1, %v1066_v4  ;;  %v2002_v63 = vld [vmem:[%s2098_s10 + $0x10] sm:$0xff]  ;;  %v2003_v4 = vld [vmem:[%s2098_s10 + $0x20] sm:$0xff] }
 0x184   : > { %v570_v0 = vpop.f32.mrf.mxu0 }
 0x185   : > { %v772_v8 = vunpack.c.l.b16 %v708_v5  ;;  %v609_v9 = vmul.f32 %v2170_v22, %v570_v0  ;;  %1892 = vmatmul.msk.bf16.gmra.mxu1 %vm1191_vm10, %v1148_v7  ;;  %1926 = vmatmul.msk.bf16.gmra.mxu2 %vm1191_vm10, %v1148_v7 }
 0x186   : > { %1960 = vmatmul.msk.bf16.gmra.mxu3 %vm1191_vm10, %v1148_v7 }
 0x187   : > { %v789_v10 = vpack.c.b16 %v772_v8, %v771_v6  ;;  %v645_v20 = vadd.f32 %v2178_v28, %v609_v9  ;;  %v2004_v6 = vld [vmem:[%s2098_s10 + $0x48] sm:$0xff]  ;;  %v931_v9 = vsel %vm2359_vm7, 0, %v2397_v51 }
 0x188   : > { %v2005_v8 = vld [vmem:[%s2098_s10 + $0x28] sm:$0xff] }
 0x189   : > { %1033 = vrot.lane.b32.xlu1 %v789_v10, %s2031_s17  ;;  %v890_v11 = vshrl.u32 %v789_v10, 16  ;;  %v893_v12 = vshll.u32 %v789_v10, 16  ;;  %v677_v24 = vmax.f32 %v645_v20, 0.0  ;;  %v2006_v20 = vld [vmem:[%s2098_s10 + $0x38] sm:$0xff] }
 0x18a   : > { %v1070_v61 = vpop.permute.xlu2 %1069 }
 0x18b   : > { %v966_v15 = vrot.slane %v893_v12, 1  ;;  %v892_v17 = vrot.slane %v890_v11, 7  ;;  %v709_v2 = vpack.c.bf16 %v677_v24, %v677_v24  ;;  %v2008_v24 = vld [vmem:[%s2098_s10 + $0x60] sm:$0xff] }
 0x18c   : > { %v572_v23 = vpop.f32.mrf.mxu0 }
 0x18d   : > { %v610_v25 = vmul.f32 %v2170_v22, %v572_v23  ;;  %v967_v27 = vor.u32 %v966_v15, %v890_v11  ;;  %v2487_v29 = vor.u32 %v893_v12, %v892_v17  ;;  %v1109_v22 = vsel %vm1085_vm8, %v929_v33, %v1020_v30  ;;  %v2007_v23 = vld [vmem:[%s2098_s10 + $0x40] sm:$0xff]  ;;  %v2009_v30 = vld [vmem:[%s2098_s10 + $0x50] sm:$0xff] }
 0x18e   : > { %v773_v35 = vunpack.c.l.b16 %v709_v2  ;;  %v2010_v2 = vld [vmem:[%s2098_s10 + $0x58] sm:$0xff] }
 0x18f   : > { %v646_v31 = vadd.f32 %v2178_v28, %v610_v25  ;;  %v1003_v32 = vsel %vm2198_vm4, %v967_v27, 0 }
 0x190   : > { %1081 = vrot.lane.b32.xlu2 %v1003_v32, %s2032_s18 }
 0x191   : > { %v678_v36 = vmax.f32 %v646_v31, 0.0 }
 0x192   : > { %v1068_v37 = vpop.permute.xlu0 %1067 }
 0x193   : > { %v710_v34 = vpack.c.bf16 %v678_v36, %v678_v36  ;;  %v1150_v38 = vsel %vm1134_vm9, %v1109_v22, %v1068_v37  ;;  %v2011_v36 = vld [vmem:[%s2098_s10 + $0x78] sm:$0xff]  ;;  %v932_v22 = vsel %vm2359_vm7, 0, %v2415_v21 }
 0x195   : > { %v774_v28 = vunpack.c.l.b16 %v710_v34  ;;  %1893 = vmatmul.msk.bf16.gmra.mxu1 %vm1191_vm10, %v1150_v38  ;;  %1927 = vmatmul.msk.bf16.gmra.mxu2 %vm1191_vm10, %v1150_v38  ;;  %v2012_v34 = vld [vmem:[%s2098_s10 + $0x68] sm:$0xff] }
 0x196   : > { %1961 = vmatmul.msk.bf16.gmra.mxu3 %vm1191_vm10, %v1150_v38 }
 0x197   : > { %v790_v39 = vpack.c.b16 %v774_v28, %v773_v35 }
 0x198   : > { %1633 = vrot.lane.b32.xlu2 %v1998_v49, %s2033_s20 }
 0x199   : > { %1035 = vrot.lane.b32.xlu0 %v790_v39, %s2031_s17  ;;  %v897_v45 = vshrl.u32 %v790_v39, 16  ;;  %v900_v40 = vshll.u32 %v790_v39, 16 }
 0x19b   : > { %v968_v41 = vrot.slane %v900_v40, 1  ;;  %v899_v42 = vrot.slane %v897_v45, 7  ;;  %v1022_v50 = vpop.permute.xlu1 %1021 }
 0x19c   : > { %v1112_v57 = vsel %vm1085_vm8, %v930_v54, %v1022_v50 }
 0x19d   : > { %v969_v43 = vor.u32 %v968_v41, %v897_v45  ;;  %v2504_v3 = vor.u32 %v900_v40, %v899_v42  ;;  %v1152_v60 = vsel %vm1134_vm9, %v1112_v57, %v1070_v61  ;;  %v2013_v45 = vld [vmem:[%s2098_s10 + $0x70] sm:$0xff] }
 0x19e   : > { %v2014_v40 = vld [vmem:[%s2098_s10 + $0x90] sm:$0xff] }
 0x19f   : > { %v1004_v52 = vsel %vm2198_vm4, %v969_v43, 0  ;;  %v2015_v43 = vld [vmem:[%s2098_s10 + $0x80] sm:$0xff] }
 0x1a0   : > { %1639 = vrot.lane.b32.xlu2 %v1999_v55, %s2033_s20  ;;  %1083 = vrot.lane.b32.xlu1 %v1004_v52, %s2032_s18  ;;  %v933_v55 = vsel %vm2359_vm7, 0, %v2433_v53  ;;  %s2660_s18 = scalar_lea.vmem %s2826_s7, %s1972_s30 }
 0x1a1   : > { %1635 = vrot.lane.b32.xlu0 %v2000_v58, %s2033_s20  ;;  %v2016_v58 = vld [vmem:[%s2098_s10 + $0x88] sm:$0xff] }
 0x1a2   : > { %v1233_v59 = vpop.f32.mrf.mxu1 }
 0x1a3   : > { %v1026_v32 = vpop.permute.xlu2 %1025 }
 0x1a4   : > { %v1118_v38 = vsel %vm1085_vm8, %v932_v22, %v1026_v32 }
 0x1a5   : > { %1894 = vmatmul.msk.bf16.gmra.mxu1 %vm1191_vm10, %v1152_v60  ;;  %1928 = vmatmul.msk.bf16.gmra.mxu2 %vm1191_vm10, %v1152_v60 }
 0x1a6   : > { %1962 = vmatmul.msk.bf16.gmra.mxu3 %vm1191_vm10, %v1152_v60 }
 0x1a8   : > { %v2521_v16 = vpop.f32.mrf.mxu2  ;;  %1645 = vrot.lane.b32.xlu2 %v2001_v62, %s2033_s20  ;;  %1637 = vrot.lane.b32.xlu1 %v2002_v63, %s2033_s20  ;;  %v2018_v63 = vld [vmem:[%s2098_s10 + $0x98] sm:$0xff] }
 0x1a9   : > { %v1459_v1 = vpop.f32.mrf.mxu3  ;;  %1641 = vrot.lane.b32.xlu0 %v2003_v4, %s2033_s20 }
 0x1aa   : > { %v2529_v5 = vpop.f32.mrf.mxu1 }
 0x1ab   : > { %v1024_v7 = vpop.permute.xlu0 %1023 }
 0x1ac   : > { %v1115_v11 = vsel %vm1085_vm8, %v931_v9, %v1024_v7 }
 0x1b0   : > { %v1347_v0 = vpop.f32.mrf.mxu2  ;;  %1651 = vrot.lane.b32.xlu2 %v2004_v6, %s2033_s20  ;;  %1643 = vrot.lane.b32.xlu1 %v2005_v8, %s2033_s20  ;;  %v2020_v8 = vld [vmem:[%s2098_s10 + $0xb0] sm:$0xff] }
 0x1b1   : > { %v1460_v10 = vpop.f32.mrf.mxu3  ;;  %1647 = vrot.lane.b32.xlu0 %v2006_v20, %s2033_s20 }
 0x1b2   : > { %v1238_v12 = vpop.f32.mrf.mxu1  ;;  %v1072_v15 = vpop.permute.xlu1 %1071 }
 0x1b3   : > { %v1154_v17 = vsel %vm1134_vm9, %v1115_v11, %v1072_v15 }
 0x1b5   : > { %1895 = vmatmul.msk.bf16.gmra.mxu1 %vm1191_vm10, %v1154_v17  ;;  %1929 = vmatmul.msk.bf16.gmra.mxu2 %vm1191_vm10, %v1154_v17 }
 0x1b6   : > { %1963 = vmatmul.msk.bf16.gmra.mxu3 %vm1191_vm10, %v1154_v17 }
 0x1b8   : > { %v1350_v51 = vpop.f32.mrf.mxu2  ;;  %1649 = vrot.lane.b32.xlu1 %v2007_v23, %s2033_s20  ;;  %1657 = vrot.lane.b32.xlu2 %v2008_v24, %s2033_s20 }
 0x1b9   : > { %v1539_v25 = vadd.f32 %v1350_v51, %v1233_v59  ;;  %v2549_v27 = vpop.f32.mrf.mxu3  ;;  %1653 = vrot.lane.b32.xlu0 %v2009_v30, %s2033_s20  ;;  %v2017_v59 = vld [vmem:[%s2098_s10 + $0xa8] sm:$0xff] }
 0x1ba   : > { %v1240_v31 = vpop.f32.mrf.mxu1  ;;  %v1076_v53 = vpop.permute.xlu2 %1075  ;;  %v2022_v51 = vld [vmem:[%s2098_s10 + $0xc8] sm:$0xff] }
 0x1c0   : > { %v2553_v33 = vpop.f32.mrf.mxu2  ;;  %1655 = vrot.lane.b32.xlu1 %v2010_v2, %s2033_s20  ;;  %1663 = vrot.lane.b32.xlu2 %v2011_v36, %s2033_s20  ;;  %v935_v36 = vsel %vm2359_vm7, 0, %v2469_v56 }
 0x1c1   : > { %v1464_v37 = vpop.f32.mrf.mxu3  ;;  %1659 = vrot.lane.b32.xlu0 %v2012_v34, %s2033_s20 }
 0x1c2   : > { %v2565_v35 = vadd.f32 %v1464_v37, %v1347_v0  ;;  %v2567_v28 = vpop.f32.mrf.mxu1  ;;  %v1074_v39 = vpop.permute.xlu0 %1073  ;;  %v2019_v0 = vld [vmem:[%s2098_s10 + $0xa0] sm:$0xff] }
 0x1c3   : > { %v1156_v49 = vsel %vm1134_vm9, %v1118_v38, %v1074_v39 }
 0x1c5   : > { %1896 = vmatmul.msk.bf16.gmra.mxu1 %vm1191_vm10, %v1156_v49  ;;  %1930 = vmatmul.msk.bf16.gmra.mxu2 %vm1191_vm10, %v1156_v49 }
 0x1c6   : > { %1964 = vmatmul.msk.bf16.gmra.mxu3 %vm1191_vm10, %v1156_v49 }
 0x1c8   : > { %v1355_v21 = vpop.f32.mrf.mxu2  ;;  %1661 = vrot.lane.b32.xlu1 %v2013_v45, %s2033_s20  ;;  %1669 = vrot.lane.b32.xlu2 %v2014_v40, %s2033_s20 }
 0x1c9   : > { %v1541_v41 = vadd.f32 %v1355_v21, %v1238_v12  ;;  %v1467_v42 = vpop.f32.mrf.mxu3  ;;  %1665 = vrot.lane.b32.xlu0 %v2015_v43, %s2033_s20  ;;  %v2021_v12 = vld [vmem:[%s2098_s10 + $0xb8] sm:$0xff] }
 0x1ca   : > { %v2579_v50 = vadd.f32 %v1539_v25, %v1467_v42  ;;  %v2581_v52 = vpop.f32.mrf.mxu1 }
 0x1cb   : > { %v1028_v54 = vpop.permute.xlu1 %1027 }
 0x1cc   : > { %v1121_v61 = vsel %vm1085_vm8, %v933_v55, %v1028_v54 }
 0x1cd   : > { %v1158_v4 = vsel %vm1134_vm9, %v1121_v61, %v1076_v53 }
 0x1d0   : > { %v1357_v57 = vpop.f32.mrf.mxu2  ;;  %1667 = vrot.lane.b32.xlu1 %v2016_v58, %s2033_s20  ;;  %1675 = vrot.lane.b32.xlu2 %v2017_v59, %s2033_s20 }
 0x1d1   : > { %v2591_v60 = vadd.f32 %v1357_v57, %v1240_v31  ;;  %v2593_v62 = vpop.f32.mrf.mxu3  ;;  %1671 = vrot.lane.b32.xlu0 %v2018_v63, %s2033_s20 }
 0x1d2   : > { %v2597_v1 = vpop.f32.mrf.mxu1 }
 0x1d3   : > { %v1032_v15 = vpop.permute.xlu2 %1031 }
 0x1d5   : > { %1897 = vmatmul.msk.bf16.gmra.mxu1 %vm1191_vm10, %v1158_v4  ;;  %1931 = vmatmul.msk.bf16.gmra.mxu2 %vm1191_vm10, %v1158_v4 }
 0x1d6   : > { %1965 = vmatmul.msk.bf16.gmra.mxu3 %vm1191_vm10, %v1158_v4 }
 0x1d8   : > { %v1360_v7 = vpop.f32.mrf.mxu2  ;;  %1673 = vrot.lane.b32.xlu1 %v2019_v0, %s2033_s20  ;;  %1681 = vrot.lane.b32.xlu2 %v2227_v44, %s2033_s20  ;;  %v934_v44 = vsel %vm2359_vm7, 0, %v2451_v26  ;;  %v937_v0 = vsel %vm2359_vm7, 0, %v2504_v3 }
 0x1d9   : > { %v1472_v6 = vpop.f32.mrf.mxu3  ;;  %1677 = vrot.lane.b32.xlu0 %v2020_v8, %s2033_s20  ;;  %v1543_v40 = vadd.f32 %v1360_v7, %v2567_v28 }
 0x1da   : > { %v2609_v9 = vadd.f32 %v1541_v41, %v1472_v6  ;;  %v2611_v10 = vpop.f32.mrf.mxu1 }
 0x1db   : > { %v1030_v20 = vpop.permute.xlu0 %1029 }
 0x1dc   : > { %v1124_v23 = vsel %vm1085_vm8, %v934_v44, %v1030_v20 }
 0x1e0   : > { %v2613_v11 = vpop.f32.mrf.mxu2  ;;  %1679 = vrot.lane.b32.xlu1 %v2021_v12, %s2033_s20  ;;  %1687 = vrot.lane.b32.xlu2 %v2250_v14, %s2033_s20 }
 0x1e1   : > { %v2622_v17 = vpop.f32.mrf.mxu3  ;;  %1683 = vrot.lane.b32.xlu0 %v2022_v51, %s2033_s20 }
 0x1e2   : > { %v2627_v24 = vpop.f32.mrf.mxu1  ;;  %v1078_v25 = vpop.permute.xlu1 %1077 }
 0x1e3   : > { %v1160_v30 = vsel %vm1134_vm9, %v1124_v23, %v1078_v25 }
 0x1e5   : > { %1898 = vmatmul.msk.bf16.gmra.mxu1 %vm1191_vm10, %v1160_v30  ;;  %1932 = vmatmul.msk.bf16.gmra.mxu2 %vm1191_vm10, %v1160_v30 }
 0x1e6   : > { %1966 = vmatmul.msk.bf16.gmra.mxu3 %vm1191_vm10, %v1160_v30 }
 0x1e8   : > { %v2633_v14 = vpop.f32.mrf.mxu2  ;;  %1685 = vrot.lane.b32.xlu1 %v2247_v13, %s2033_s20  ;;  %1693 = vrot.lane.b32.xlu2 %v2293_v18, %s2033_s20  ;;  %v1569_v13 = vadd.f32 %v2549_v27, %v2521_v16  ;;  %v1540_v16 = vadd.f32 %v2553_v33, %v2529_v5  ;;  %v936_v5 = vsel %vm2359_vm7, 0, %v2487_v29 }
 0x1e9   : > { %v1477_v26 = vpop.f32.mrf.mxu3  ;;  %1689 = vrot.lane.b32.xlu0 %v2270_v46, %s2033_s20  ;;  %v1127_v46 = vsel %vm1085_vm8, %v935_v36, %v1032_v15 }
 0x1ea   : > { %v2641_v31 = vpop.f32.mrf.mxu1  ;;  %v1082_v32 = vpop.permute.xlu2 %1081  ;;  %v1572_v38 = vadd.f32 %v1540_v16, %v2593_v62  ;;  %v1575_v43 = vadd.f32 %v1543_v40, %v1477_v26 }
 0x1f0   : > { %v1367_v2 = vpop.f32.mrf.mxu2  ;;  %1691 = vrot.lane.b32.xlu1 %v2273_v47, %s2033_s20 }
 0x1f1   : > { %v2648_v22 = vpop.f32.mrf.mxu3  ;;  %1695 = vrot.lane.b32.xlu0 %v2296_v19, %s2033_s20  ;;  %v1546_v29 = vadd.f32 %v1367_v2, %v2611_v10 }
 0x1f2   : > { %v1258_v18 = vpop.f32.mrf.mxu1  ;;  %v1080_v37 = vpop.permute.xlu0 %1079 }
 0x1f3   : > { %v1162_v47 = vsel %vm1134_vm9, %v1127_v46, %v1080_v37  ;;  %v1634_v56 = vpop.permute.xlu2 %1633 }
 0x1f4   : > { %v1729_v19 = vsel %vm433_vm1, %v1569_v13, %v1634_v56  ;;  %v1544_v13 = vadd.f32 %v2613_v11, %v2581_v52  ;;  %v1545_v52 = vadd.f32 %v2633_v14, %v2597_v1 }
 0x1f5   : > { %1762 = vst.msk [vmem:[%s2660_s18] sm:$0xff] %vm1761_vm11, %v1729_v19  ;;  %1899 = vmatmul.msk.bf16.gmra.mxu1 %vm1191_vm10, %v1162_v47  ;;  %1933 = vmatmul.msk.bf16.gmra.mxu2 %vm1191_vm10, %v1162_v47 }
 0x1f6   : > { %1967 = vmatmul.msk.bf16.gmra.mxu3 %vm1191_vm10, %v1162_v47  ;;  %v1576_v37 = vadd.f32 %v1544_v13, %v2648_v22 }
 0x1f8   : > { %v2671_v27 = vpop.f32.mrf.mxu2 }
 0x1f9   : > { %v2673_v34 = vpop.f32.mrf.mxu3 }
 0x1fa   : > { %v2676_v39 = vpop.f32.mrf.mxu1 }
 0x1fb   : > { %v1640_v49 = vpop.permute.xlu2 %1639  ;;  %v1034_v45 = vpop.permute.xlu1 %1033 }
 0x1fc   : > { %v1732_v21 = vsel %vm433_vm1, %v1572_v38, %v1640_v49  ;;  %v1130_v41 = vsel %vm1085_vm8, %v936_v5, %v1034_v45 }
 0x1fd   : > { %1765 = vst.msk [vmem:[%s2660_s18 + $0x18] sm:$0xff] %vm1761_vm11, %v1732_v21  ;;  %v1164_v58 = vsel %vm1134_vm9, %v1130_v41, %v1082_v32 }
 0x200   : > { %v2685_v33 = vpop.f32.mrf.mxu2 }
 0x201   : > { %v1484_v42 = vpop.f32.mrf.mxu3  ;;  %v1548_v1 = vadd.f32 %v2685_v33, %v2641_v31 }
 0x202   : > { %v2688_v54 = vpop.f32.mrf.mxu1  ;;  %v1578_v61 = vadd.f32 %v1546_v29, %v1484_v42 }
 0x203   : > { %v1646_v55 = vpop.permute.xlu2 %1645 }
 0x204   : > { %v1735_v57 = vsel %vm433_vm1, %v1575_v43, %v1646_v55 }
 0x205   : > { %1768 = vst.msk [vmem:[%s2660_s18 + $0x30] sm:$0xff] %vm1761_vm11, %v1735_v57  ;;  %1900 = vmatmul.msk.bf16.gmra.mxu1 %vm1191_vm10, %v1164_v58  ;;  %1934 = vmatmul.msk.bf16.gmra.mxu2 %vm1191_vm10, %v1164_v58 }
 0x206   : > { %1968 = vmatmul.msk.bf16.gmra.mxu3 %vm1191_vm10, %v1164_v58 }
 0x208   : > { %v1375_v28 = vpop.f32.mrf.mxu2 }
 0x209   : > { %v1487_v59 = vpop.f32.mrf.mxu3  ;;  %v1549_v48 = vadd.f32 %v1375_v28, %v1258_v18 }
 0x20a   : > { %v1265_v62 = vpop.f32.mrf.mxu1 }
 0x20b   : > { %v1652_v63 = vpop.permute.xlu2 %1651  ;;  %v1036_v53 = vpop.permute.xlu0 %1035 }
 0x20c   : > { %v1738_v4 = vsel %vm433_vm1, %v1578_v61, %v1652_v63  ;;  %v1133_v8 = vsel %vm1085_vm8, %v937_v0, %v1036_v53 }
 0x20d   : > { %1771 = vst.msk [vmem:[%s2660_s18 + $0x48] sm:$0xff] %vm1761_vm11, %v1738_v4 }
 0x210   : > { %v1377_v7 = vpop.f32.mrf.mxu2 }
 0x211   : > { %v1489_v6 = vpop.f32.mrf.mxu3 }
 0x212   : > { %v2705_v10 = vpop.f32.mrf.mxu1  ;;  %v1084_v20 = vpop.permute.xlu1 %1083 }
 0x213   : > { %v1166_v12 = vsel %vm1134_vm9, %v1133_v8, %v1084_v20  ;;  %v1636_v15 = vpop.permute.xlu0 %1635  ;;  %v1658_v23 = vpop.permute.xlu2 %1657 }
 0x214   : > { %v1730_v44 = vsel %vm433_vm1, %v2565_v35, %v1636_v15 }
 0x215   : > { %1763 = vst.msk [vmem:[%s2660_s18 + $0x8] sm:$0xff] %vm1761_vm11, %v1730_v44  ;;  %1901 = vmatmul.msk.bf16.gmra.mxu1 %vm1191_vm10, %v1166_v12  ;;  %1935 = vmatmul.msk.bf16.gmra.mxu2 %vm1191_vm10, %v1166_v12 }
 0x216   : > { %1969 = vmatmul.msk.bf16.gmra.mxu3 %vm1191_vm10, %v1166_v12 }
 0x218   : > { %v1380_v3 = vpop.f32.mrf.mxu2 }
 0x219   : > { %v1492_v51 = vpop.f32.mrf.mxu3 }
 0x21a   : > { %v1581_v25 = vadd.f32 %v1549_v48, %v1492_v51  ;;  %v2715_v30 = vpop.f32.mrf.mxu1  ;;  %v1638_v26 = vpop.permute.xlu1 %1637 }
 0x21b   : > { %v1731_v35 = vsel %vm433_vm1, %v2579_v50, %v1638_v26  ;;  %v1642_v32 = vpop.permute.xlu0 %1641  ;;  %v1574_v50 = vadd.f32 %v2591_v60, %v2622_v17  ;;  %v1547_v60 = vadd.f32 %v2671_v27, %v2627_v24  ;;  %v1577_v17 = vadd.f32 %v1545_v52, %v2673_v34  ;;  %v1664_v42 = vpop.permute.xlu2 %1663 }
 0x21c   : > { %v1741_v2 = vsel %vm433_vm1, %v1581_v25, %v1658_v23  ;;  %1764 = vst.msk [vmem:[%s2660_s18 + $0x10] sm:$0xff] %vm1761_vm11, %v1731_v35  ;;  %v1733_v36 = vsel %vm433_vm1, %v2609_v9, %v1642_v32  ;;  %v1550_v24 = vadd.f32 %v1377_v7, %v2676_v39  ;;  %v1580_v34 = vadd.f32 %v1548_v1, %v1489_v6 }
 0x21d   : > { %1774 = vst.msk [vmem:[%s2660_s18 + $0x60] sm:$0xff] %vm1761_vm11, %v1741_v2  ;;  %v1579_v38 = vadd.f32 %v1547_v60, %v1487_v59  ;;  %v1551_v39 = vadd.f32 %v1380_v3, %v2688_v54 }
 0x21e   : > { %1766 = vst.msk [vmem:[%s2660_s18 + $0x20] sm:$0xff] %vm1761_vm11, %v1733_v36 }
 0x220   : > { %v1382_v46 = vpop.f32.mrf.mxu2 }
 0x221   : > { %v1494_v18 = vpop.f32.mrf.mxu3  ;;  %v1552_v14 = vadd.f32 %v1382_v46, %v1265_v62 }
 0x222   : > { %v1273_v47 = vpop.f32.mrf.mxu1  ;;  %v1644_v56 = vpop.permute.xlu1 %1643  ;;  %v1582_v43 = vadd.f32 %v1550_v24, %v1494_v18 }
 0x223   : > { %v1734_v19 = vsel %vm433_vm1, %v1574_v50, %v1644_v56  ;;  %v1648_v9 = vpop.permute.xlu0 %1647  ;;  %v1670_v25 = vpop.permute.xlu2 %1669 }
 0x224   : > { %1767 = vst.msk [vmem:[%s2660_s18 + $0x28] sm:$0xff] %vm1761_vm11, %v1734_v19  ;;  %v1736_v16 = vsel %vm433_vm1, %v1576_v37, %v1648_v9 }
 0x225   : > { %1769 = vst.msk [vmem:[%s2660_s18 + $0x38] sm:$0xff] %vm1761_vm11, %v1736_v16 }
 0x228   : > { %v1385_v11 = vpop.f32.mrf.mxu2 }
 0x229   : > { %v1497_v22 = vpop.f32.mrf.mxu3  ;;  %v1553_v33 = vadd.f32 %v1385_v11, %v2705_v10 }
 0x22a   : > { %v1275_v49 = vpop.f32.mrf.mxu1  ;;  %v1650_v21 = vpop.permute.xlu1 %1649  ;;  %v1583_v62 = vadd.f32 %v1551_v39, %v1497_v22 }
 0x22b   : > { %v1737_v45 = vsel %vm433_vm1, %v1577_v17, %v1650_v21  ;;  %v1654_v40 = vpop.permute.xlu0 %1653  ;;  %v1676_v22 = vpop.permute.xlu2 %1675 }
 0x22c   : > { %1770 = vst.msk [vmem:[%s2660_s18 + $0x40] sm:$0xff] %vm1761_vm11, %v1737_v45  ;;  %v1739_v5 = vsel %vm433_vm1, %v1579_v38, %v1654_v40 }
 0x22d   : > { %1772 = vst.msk [vmem:[%s2660_s18 + $0x50] sm:$0xff] %vm1761_vm11, %v1739_v5 }
 0x230   : > { %v1387_v27 = vpop.f32.mrf.mxu2 }
 0x231   : > { %v1499_v41 = vpop.f32.mrf.mxu3  ;;  %v1554_v54 = vadd.f32 %v1387_v27, %v2715_v30 }
 0x232   : > { %v1584_v55 = vadd.f32 %v1552_v14, %v1499_v41  ;;  %v1278_v57 = vpop.f32.mrf.mxu1  ;;  %v1656_v58 = vpop.permute.xlu1 %1655 }
 0x233   : > { %v1740_v29 = vsel %vm433_vm1, %v1580_v34, %v1656_v58  ;;  %v1660_v28 = vpop.permute.xlu0 %1659 }
 0x234   : > { %v1744_v59 = vsel %vm433_vm1, %v1584_v55, %v1664_v42  ;;  %1773 = vst.msk [vmem:[%s2660_s18 + $0x58] sm:$0xff] %vm1761_vm11, %v1740_v29  ;;  %v1742_v31 = vsel %vm433_vm1, %v1582_v43, %v1660_v28 }
 0x235   : > { %1777 = vst.msk [vmem:[%s2660_s18 + $0x78] sm:$0xff] %vm1761_vm11, %v1744_v59 }
 0x236   : > { %1775 = vst.msk [vmem:[%s2660_s18 + $0x68] sm:$0xff] %vm1761_vm11, %v1742_v31  ;;  %v1682_v31 = vpop.permute.xlu2 %1681 }
 0x238   : > { %v1390_v61 = vpop.f32.mrf.mxu2 }
 0x239   : > { %v1502_v63 = vpop.f32.mrf.mxu3  ;;  %v1555_v3 = vadd.f32 %v1390_v61, %v1273_v47 }
 0x23a   : > { %v1585_v53 = vadd.f32 %v1553_v33, %v1502_v63  ;;  %v1280_v4 = vpop.f32.mrf.mxu1  ;;  %v1662_v7 = vpop.permute.xlu1 %1661 }
 0x23b   : > { %v1743_v0 = vsel %vm433_vm1, %v1583_v62, %v1662_v7  ;;  %v1666_v6 = vpop.permute.xlu0 %1665 }
 0x23c   : > { %1776 = vst.msk [vmem:[%s2660_s18 + $0x70] sm:$0xff] %vm1761_vm11, %v1743_v0  ;;  %v1745_v8 = vsel %vm433_vm1, %v1585_v53, %v1666_v6 }
 0x23d   : > { %1778 = vst.msk [vmem:[%s2660_s18 + $0x80] sm:$0xff] %vm1761_vm11, %v1745_v8 }
 0x240   : > { %v1392_v10 = vpop.f32.mrf.mxu2 }
 0x241   : > { %v1504_v20 = vpop.f32.mrf.mxu3  ;;  %v1556_v30 = vadd.f32 %v1392_v10, %v1275_v49 }
 0x242   : > { %v1586_v12 = vadd.f32 %v1554_v54, %v1504_v20  ;;  %v1283_v15 = vpop.f32.mrf.mxu1  ;;  %v1668_v44 = vpop.permute.xlu1 %1667 }
 0x243   : > { %v1672_v13 = vpop.permute.xlu0 %1671 }
 0x244   : > { %v1746_v48 = vsel %vm433_vm1, %v1586_v12, %v1668_v44 }
 0x245   : > { %1779 = vst.msk [vmem:[%s2660_s18 + $0x88] sm:$0xff] %vm1761_vm11, %v1746_v48  ;;  %v1688_v48 = vpop.permute.xlu2 %1687 }
 0x248   : > { %v1395_v51 = vpop.f32.mrf.mxu2 }
 0x249   : > { %v1507_v23 = vpop.f32.mrf.mxu3  ;;  %v1557_v37 = vadd.f32 %v1395_v51, %v1278_v57 }
 0x24a   : > { %v1587_v26 = vadd.f32 %v1555_v3, %v1507_v23  ;;  %v1285_v35 = vpop.f32.mrf.mxu1  ;;  %v1674_v19 = vpop.permute.xlu1 %1673 }
 0x24b   : > { %v1678_v1 = vpop.permute.xlu0 %1677 }
 0x24c   : > { %v1747_v32 = vsel %vm433_vm1, %v1587_v26, %v1670_v25 }
 0x24d   : > { %1780 = vst.msk [vmem:[%s2660_s18 + $0x90] sm:$0xff] %vm1761_vm11, %v1747_v32 }
 0x250   : > { %v1397_v2 = vpop.f32.mrf.mxu2 }
 0x251   : > { %v1509_v36 = vpop.f32.mrf.mxu3  ;;  %v1558_v60 = vadd.f32 %v1397_v2, %v1280_v4 }
 0x252   : > { %v1588_v46 = vadd.f32 %v1556_v30, %v1509_v36  ;;  %v1288_v50 = vpop.f32.mrf.mxu1  ;;  %v1680_v43 = vpop.permute.xlu1 %1679 }
 0x253   : > { %v1684_v4 = vpop.permute.xlu0 %1683  ;;  %v1694_v36 = vpop.permute.xlu2 %1693 }
 0x254   : > { %v1748_v18 = vsel %vm433_vm1, %v1588_v46, %v1672_v13 }
 0x255   : > { %1781 = vst.msk [vmem:[%s2660_s18 + $0x98] sm:$0xff] %vm1761_vm11, %v1748_v18 }
 0x258   : > { %v1400_v47 = vpop.f32.mrf.mxu2 }
 0x259   : > { %v1512_v56 = vpop.f32.mrf.mxu3  ;;  %v1559_v45 = vadd.f32 %v1400_v47, %v1283_v15 }
 0x25a   : > { %v1589_v9 = vadd.f32 %v1557_v37, %v1512_v56  ;;  %v1290_v16 = vpop.f32.mrf.mxu1  ;;  %v1686_v20 = vpop.permute.xlu1 %1685 }
 0x25b   : > { %v1690_v32 = vpop.permute.xlu0 %1689 }
 0x25c   : > { %v1749_v52 = vsel %vm433_vm1, %v1589_v9, %v1674_v19 }
 0x25d   : > { %1782 = vst.msk [vmem:[%s2660_s18 + $0xa0] sm:$0xff] %vm1761_vm11, %v1749_v52 }
 0x260   : > { %v1402_v11 = vpop.f32.mrf.mxu2 }
 0x261   : > { %v1514_v17 = vpop.f32.mrf.mxu3  ;;  %v1560_v34 = vadd.f32 %v1402_v11, %v1285_v35 }
 0x262   : > { %v1590_v38 = vadd.f32 %v1558_v60, %v1514_v17  ;;  %v1293_v49 = vpop.f32.mrf.mxu1  ;;  %v1692_v60 = vpop.permute.xlu1 %1691 }
 0x263   : > { %v1696_v9 = vpop.permute.xlu0 %1695 }
 0x264   : > { %v1750_v21 = vsel %vm433_vm1, %v1590_v38, %v1676_v22 }
 0x265   : > { %1783 = vst.msk [vmem:[%s2660_s18 + $0xa8] sm:$0xff] %vm1761_vm11, %v1750_v21 }
 0x268   : > { %v1405_v40 = vpop.f32.mrf.mxu2 }
 0x269   : > { %v1517_v5 = vpop.f32.mrf.mxu3  ;;  %v1561_v29 = vadd.f32 %v1405_v40, %v1288_v50 }
 0x26a   : > { %v1591_v24 = vadd.f32 %v1559_v45, %v1517_v5  ;;  %v1295_v14 = vpop.f32.mrf.mxu1 }
 0x26c   : > { %v1751_v27 = vsel %vm433_vm1, %v1591_v24, %v1678_v1 }
 0x26d   : > { %1784 = vst.msk [vmem:[%s2660_s18 + $0xb0] sm:$0xff] %vm1761_vm11, %v1751_v27 }
 0x270   : > { %v1407_v41 = vpop.f32.mrf.mxu2 }
 0x271   : > { %v1519_v42 = vpop.f32.mrf.mxu3  ;;  %v1562_v62 = vadd.f32 %v1407_v41, %v1290_v16 }
 0x272   : > { %v1592_v55 = vadd.f32 %v1560_v34, %v1519_v42  ;;  %v1298_v57 = vpop.f32.mrf.mxu1 }
 0x274   : > { %v1752_v58 = vsel %vm433_vm1, %v1592_v55, %v1680_v43 }
 0x275   : > { %1785 = vst.msk [vmem:[%s2660_s18 + $0xb8] sm:$0xff] %vm1761_vm11, %v1752_v58 }
 0x278   : > { %v1410_v28 = vpop.f32.mrf.mxu2 }
 0x279   : > { %v1522_v59 = vpop.f32.mrf.mxu3  ;;  %v1563_v8 = vadd.f32 %v1410_v28, %v1293_v49 }
 0x27a   : > { %v1593_v39 = vadd.f32 %v1561_v29, %v1522_v59  ;;  %v1300_v33 = vpop.f32.mrf.mxu1 }
 0x27c   : > { %v1753_v61 = vsel %vm433_vm1, %v1593_v39, %v1682_v31 }
 0x27d   : > { %1786 = vst.msk [vmem:[%s2660_s18 + $0xc0] sm:$0xff] %vm1761_vm11, %v1753_v61 }
 0x280   : > { %v1412_v63 = vpop.f32.mrf.mxu2 }
 0x281   : > { %v1524_v53 = vpop.f32.mrf.mxu3  ;;  %v1564_v3 = vadd.f32 %v1412_v63, %v1295_v14 }
 0x282   : > { %v1594_v7 = vadd.f32 %v1562_v62, %v1524_v53  ;;  %v1303_v0 = vpop.f32.mrf.mxu1 }
 0x284   : > { %v1754_v6 = vsel %vm433_vm1, %v1594_v7, %v1684_v4 }
 0x285   : > { %1787 = vst.msk [vmem:[%s2660_s18 + $0xc8] sm:$0xff] %vm1761_vm11, %v1754_v6 }
 0x288   : > { %v1415_v54 = vpop.f32.mrf.mxu2 }
 0x289   : > { %v1527_v10 = vpop.f32.mrf.mxu3  ;;  %v1565_v30 = vadd.f32 %v1415_v54, %v1298_v57 }
 0x28a   : > { %v1595_v12 = vadd.f32 %v1563_v8, %v1527_v10  ;;  %v1305_v15 = vpop.f32.mrf.mxu1 }
 0x28c   : > { %v1755_v44 = vsel %vm433_vm1, %v1595_v12, %v1686_v20 }
 0x28d   : > { %1788 = vst.msk [vmem:[%s2660_s18 + $0xd0] sm:$0xff] %vm1761_vm11, %v1755_v44 }
 0x290   : > { %v1417_v51 = vpop.f32.mrf.mxu2 }
 0x291   : > { %v1529_v23 = vpop.f32.mrf.mxu3  ;;  %v1566_v56 = vadd.f32 %v1417_v51, %v1300_v33 }
 0x292   : > { %v1596_v25 = vadd.f32 %v1564_v3, %v1529_v23  ;;  %v1308_v26 = vpop.f32.mrf.mxu1 }
 0x294   : > { %v1756_v35 = vsel %vm433_vm1, %v1596_v25, %v1688_v48 }
 0x295   : > { %1789 = vst.msk [vmem:[%s2660_s18 + $0xd8] sm:$0xff] %vm1761_vm11, %v1756_v35 }
 0x298   : > { %v1420_v2 = vpop.f32.mrf.mxu2 }
 0x299   : > { %v1567_v13 = vadd.f32 %v1420_v2, %v1303_v0  ;;  %v1532_v46 = vpop.f32.mrf.mxu3 }
 0x29a   : > { %v1597_v50 = vadd.f32 %v1565_v30, %v1532_v46  ;;  %v1309_v18 = vpop.f32.mrf.mxu1 }
 0x29b   : > { %v1759_v37 = vsel %vm433_vm1, %v1567_v13, %v1694_v36 }
 0x29c   : > { %1792 = vst.msk [vmem:[%s2660_s18 + $0xf0] sm:$0xff] %vm1761_vm11, %v1759_v37  ;;  %v1757_v47 = vsel %vm433_vm1, %v1597_v50, %v1690_v32 }
 0x29d   : > { %1790 = vst.msk [vmem:[%s2660_s18 + $0xe0] sm:$0xff] %vm1761_vm11, %v1757_v47 }
 0x2a0   : > { %v1422_v19 = vpop.f32.mrf.mxu2 }
 0x2a1   : > { %v1568_v16 = vadd.f32 %v1422_v19, %v1305_v15  ;;  %v1534_v52 = vpop.f32.mrf.mxu3 }
 0x2a2   : > { %v1598_v11 = vadd.f32 %v1566_v56, %v1534_v52 }
 0x2a3   : > { %v1760_v17 = vsel %vm433_vm1, %v1568_v16, %v1696_v9 }
 0x2a4   : > { %1793 = vst.msk [vmem:[%s2660_s18 + $0xf8] sm:$0xff] %vm1761_vm11, %v1760_v17  ;;  %v1758_v22 = vsel %vm433_vm1, %v1598_v11, %v1692_v60 }
 0x2a5   : > { %1791 = vst.msk [vmem:[%s2660_s18 + $0xe8] sm:$0xff] %vm1761_vm11, %v1758_v22 }
 0x2a6 PF: > { %s17_s24 = sadd.s32 1, %s2029_s24  }
 0x2a7   : > { %p14_p4 = scmp.ge.s32.totalorder %s17_s24, 4  }
 0x2a9   :  { %16 = sbr.rel (!%p14_p4) target bundleno = 1 (0x1), region = 80 }

</bundles_post_ra>
